<compile_context>
chip_gen: v7x
topology: tpu7x:2x2x1
jax: 0.10.0
libtpu: 0.0.40
codegen_flags: <defaults>
</compile_context>

<pallas_src>
import functools

import jax
import jax.numpy as jnp
from jax.experimental import pallas as pl
from jax.experimental.pallas import tpu as pltpu

EPS = 1e-5
LANES = 128


def _round_up(x, m):
    return ((x + m - 1) // m) * m


def conv_relu_stats_kernel(x_ref, w_ref, b_ref, y_ref, stats_ref, *, H, W, KH, KW):
    """Pass 1: conv(3x3, pad pre-applied) + bias + ReLU, plus per-tile BN stats.

    x_ref     : (1, H+KH-1, W+KW-1, Cin)  spatially pre-padded input tile
    w_ref     : (KH*KW*Cin, Cpad)         im2col weights, Cout zero-padded to lanes
    b_ref     : (1, Cpad)                 conv bias (padded)
    y_ref     : (1, H*W, Cpad)            relu(conv + bias), lane-dense
    stats_ref : (1, 2, Cpad)              per-tile [sum, sum_of_squares] over H*W rows
    """
    Cin = x_ref.shape[-1]
    x = x_ref[...].astype(jnp.float32)  # (1, Hp, Wp, Cin)

    # im2col: build one (H*W, KH*KW*Cin) patch matrix -> single MXU contraction.
    cols = []
    for kh in range(KH):
        for kw in range(KW):
            cols.append(x[:, kh:kh + H, kw:kw + W, :].reshape(H * W, Cin))
    patches = jnp.concatenate(cols, axis=-1)  # (H*W, KH*KW*Cin)

    acc = jnp.dot(patches, w_ref[...].astype(jnp.float32),
                  preferred_element_type=jnp.float32)  # (H*W, Cpad)
    acc = jnp.maximum(acc + b_ref[...], 0.0)           # bias + ReLU

    # Lane-dense store of the activations (Cpad = multiple of 128 lanes).
    y_ref[...] = acc[None].astype(y_ref.dtype)

    # Per-tile partial statistics for the global (two-pass) BatchNorm.
    s = jnp.sum(acc, axis=0, keepdims=True)        # (1, Cpad)
    ss = jnp.sum(acc * acc, axis=0, keepdims=True)  # (1, Cpad)
    stats_ref[...] = jnp.concatenate([s, ss], axis=0)[None]


def bn_apply_kernel(y_ref, scale_ref, shift_ref, o_ref):
    """Pass 2: elementwise y * scale + shift (scale/shift fold gamma/beta/mean/var)."""
    y = y_ref[...].astype(jnp.float32)
    o_ref[...] = (y * scale_ref[...] + shift_ref[...]).astype(o_ref.dtype)


def conv_block_forward(x_nchw, weight_oihw, bias, gamma, beta, *, pad=1, eps=EPS):
    """ConvBlock forward. x_nchw: (N, Cin, H, W) like PyTorch; returns (N, Cout, H, W)."""
    N, Cin, H, W = x_nchw.shape
    Cout, _, KH, KW = weight_oihw.shape
    Cpad = max(LANES, _round_up(Cout, LANES))
    K = KH * KW * Cin
    Hp, Wp = H + 2 * pad, W + 2 * pad
    HWout = H * W

    # ---- layout glue: NCHW -> NHWC, spatial zero-pad, OIHW -> im2col (K, Cpad) ----
    x_nhwc = jnp.transpose(x_nchw, (0, 2, 3, 1))
    x_pad = jnp.pad(x_nhwc, ((0, 0), (pad, pad), (pad, pad), (0, 0)))
    w_k = jnp.transpose(weight_oihw, (2, 3, 1, 0)).reshape(K, Cout)  # (kh,kw,cin) x cout
    w_k = jnp.pad(w_k, ((0, 0), (0, Cpad - Cout))).astype(jnp.float32)
    b_p = jnp.pad(bias.astype(jnp.float32), (0, Cpad - Cout)).reshape(1, Cpad)

    cparams = pltpu.CompilerParams(
        dimension_semantics=("parallel",),
        vmem_limit_bytes=32 * 1024 * 1024,  # safe budget on v5e/v6e/v7x
    )

    conv_cost = pl.CostEstimate(
        flops=2 * N * H * W * KH * KW * Cin * Cout,
        transcendentals=0,
        bytes_accessed=4 * (x_pad.size + w_k.size + b_p.size
                            + N * HWout * Cpad + N * 2 * Cpad),
    )

    # ---- pass 1: conv + bias + ReLU + per-tile stats, pipelined over N ----
    y, stats = pl.pallas_call(
        functools.partial(conv_relu_stats_kernel, H=H, W=W, KH=KH, KW=KW),
        grid=(N,),
        in_specs=[
            pl.BlockSpec((1, Hp, Wp, Cin), lambda n: (n, 0, 0, 0)),
            pl.BlockSpec((K, Cpad), lambda n: (0, 0)),
            pl.BlockSpec((1, Cpad), lambda n: (0, 0)),
        ],
        out_specs=(
            pl.BlockSpec((1, HWout, Cpad), lambda n: (n, 0, 0)),
            pl.BlockSpec((1, 2, Cpad), lambda n: (n, 0, 0)),
        ),
        out_shape=(
            jax.ShapeDtypeStruct((N, HWout, Cpad), jnp.float32),
            jax.ShapeDtypeStruct((N, 2, Cpad), jnp.float32),
        ),
        compiler_params=cparams,
        cost_estimate=conv_cost,
    )(x_pad, w_k, b_p)

    # ---- tiny global reduction + fold gamma/beta into scale/shift (plain XLA) ----
    total = jnp.sum(stats, axis=0)                 # (2, Cpad)
    count = jnp.float32(N * H * W)
    mean = total[0] / count
    var = jnp.maximum(total[1] / count - mean * mean, 0.0)  # biased variance
    g_p = jnp.pad(gamma.astype(jnp.float32), (0, Cpad - Cout))
    be_p = jnp.pad(beta.astype(jnp.float32), (0, Cpad - Cout))
    scale = (g_p * jax.lax.rsqrt(var + eps)).reshape(1, Cpad)
    shift = (be_p - mean * scale[0]).reshape(1, Cpad)

    # ---- pass 2: lane-dense elementwise normalize sweep ----
    out = pl.pallas_call(
        bn_apply_kernel,
        grid=(N,),
        in_specs=[
            pl.BlockSpec((1, HWout, Cpad), lambda n: (n, 0, 0)),
            pl.BlockSpec((1, Cpad), lambda n: (0, 0)),
            pl.BlockSpec((1, Cpad), lambda n: (0, 0)),
        ],
        out_specs=pl.BlockSpec((1, HWout, Cpad), lambda n: (n, 0, 0)),
        out_shape=jax.ShapeDtypeStruct((N, HWout, Cpad), x_nchw.dtype),
        compiler_params=cparams,
        cost_estimate=pl.CostEstimate(
            flops=2 * N * HWout * Cpad,
            transcendentals=0,
            bytes_accessed=4 * 2 * N * HWout * Cpad,
        ),
    )(y, scale, shift)

    # ---- back to PyTorch NCHW convention, drop lane padding ----
    out = out.reshape(N, H, W, Cpad)[..., :Cout]
    return jnp.transpose(out, (0, 3, 1, 2))


def _reference(x, w, b, g, be, *, pad=1, eps=EPS):
    """Pure-JAX reference of ConvBlock forward (training-mode BatchNorm)."""
    y = jax.lax.conv_general_dilated(
        x, w, window_strides=(1, 1), padding=[(pad, pad), (pad, pad)],
        dimension_numbers=("NCHW", "OIHW", "NCHW"),
        precision=jax.lax.Precision.HIGHEST)
    y = y + b.reshape(1, -1, 1, 1)
    y = jnp.maximum(y, 0.0)
    mean = jnp.mean(y, axis=(0, 2, 3), keepdims=True)
    var = jnp.mean(jnp.square(y - mean), axis=(0, 2, 3), keepdims=True)
    return ((y - mean) * jax.lax.rsqrt(var + eps) * g.reshape(1, -1, 1, 1)
            + be.reshape(1, -1, 1, 1))


if __name__ == "__main__":
    # Small shapes consistent with ConvBlock(in_channels=4, out_channels=8).
    N, Cin, Cout, H, W = 2, 4, 8, 16, 16
    KH = KW = 3

    key = jax.random.PRNGKey(0)
    k_x, k_w, k_b, k_g, k_be = jax.random.split(key, 5)

    x = jax.random.normal(k_x, (N, Cin, H, W), dtype=jnp.float32)
    weight = jax.random.normal(k_w, (Cout, Cin, KH, KW), dtype=jnp.float32) * 0.1
    bias = jax.random.normal(k_b, (Cout,), dtype=jnp.float32) * 0.1
    gamma = 1.0 + 0.1 * jax.random.normal(k_g, (Cout,), dtype=jnp.float32)
    beta = 0.1 * jax.random.normal(k_be, (Cout,), dtype=jnp.float32)

    fwd = jax.jit(functools.partial(conv_block_forward, pad=1))
    out = fwd(x, weight, bias, gamma, beta)
    jax.block_until_ready(out)
    assert out.shape == (N, Cout, H, W)

    ref = _reference(x, weight, bias, gamma, beta, pad=1)
    err = float(jnp.max(jnp.abs(out - ref)))
    assert err < 5e-2, f"max abs error vs reference too large: {err}"

    print("KERNEL_OK")
</pallas_src>

<mosaic_0001>
module attributes {stable_mosaic.version = 11 : i64} {
  func.func @bn_apply_kernel(%arg0: i32, %arg1: memref<1x256x128xf32, #tpu.memory_space<vmem>>, %arg2: memref<1x128xf32, #tpu.memory_space<vmem>>, %arg3: memref<1x128xf32, #tpu.memory_space<vmem>>, %arg4: memref<1x256x128xf32, #tpu.memory_space<vmem>>) attributes {dimension_semantics = [#tpu.dimension_semantics<parallel>], iteration_bounds = array<i64: 2>, scalar_prefetch = 0 : i64, scratch_operands = 0 : i64, tpu.core_type = #tpu.core_type<tc>, window_params = [{transform_indices = @transform_0, window_bounds = array<i64: 1, 256, 128>}, {pipeline_mode = #tpu.pipeline_mode<synchronous>, transform_indices = @transform_1, window_bounds = array<i64: 1, 128>}, {pipeline_mode = #tpu.pipeline_mode<synchronous>, transform_indices = @transform_2, window_bounds = array<i64: 1, 128>}, {transform_indices = @transform_3, window_bounds = array<i64: 1, 256, 128>}]} {
    %c0 = arith.constant 0 : index
    %c0_0 = arith.constant 0 : index
    %c0_1 = arith.constant 0 : index
    %0 = vector.load %arg1[%c0, %c0_0, %c0_1] : memref<1x256x128xf32, #tpu.memory_space<vmem>>, vector<1x256x128xf32>
    %c0_2 = arith.constant 0 : index
    %c0_3 = arith.constant 0 : index
    %1 = vector.load %arg2[%c0_2, %c0_3] : memref<1x128xf32, #tpu.memory_space<vmem>>, vector<1x128xf32>
    %2 = vector.shape_cast %1 : vector<1x128xf32> to vector<1x1x128xf32>
    %3 = vector.broadcast %2 : vector<1x1x128xf32> to vector<1x256x128xf32>
    %4 = arith.mulf %0, %3 : vector<1x256x128xf32>
    %c0_4 = arith.constant 0 : index
    %c0_5 = arith.constant 0 : index
    %5 = vector.load %arg3[%c0_4, %c0_5] : memref<1x128xf32, #tpu.memory_space<vmem>>, vector<1x128xf32>
    %6 = vector.shape_cast %5 : vector<1x128xf32> to vector<1x1x128xf32>
    %7 = vector.broadcast %6 : vector<1x1x128xf32> to vector<1x256x128xf32>
    %8 = arith.addf %4, %7 : vector<1x256x128xf32>
    %c0_6 = arith.constant 0 : index
    %c0_7 = arith.constant 0 : index
    %c0_8 = arith.constant 0 : index
    %9 = vector.load %arg4[%c0_6, %c0_7, %c0_8] : memref<1x256x128xf32, #tpu.memory_space<vmem>>, vector<1x256x128xf32>
    tpu.vector_store %arg4[%c0_6, %c0_7, %c0_8], %8 {strides = array<i32>} : memref<1x256x128xf32, #tpu.memory_space<vmem>>, vector<1x256x128xf32>,
    return
  }
  func.func @transform_0(%arg0: i32) -> (i32, i32, i32) {
    %c0_i32 = arith.constant 0 : i32
    %c0_i32_0 = arith.constant 0 : i32
    %c0_i32_1 = arith.constant 0 : i32
    return %arg0, %c0_i32, %c0_i32_0 : i32, i32, i32
  }
  func.func @transform_1(%arg0: i32) -> (i32, i32) {
    %c0_i32 = arith.constant 0 : i32
    %c0_i32_0 = arith.constant 0 : i32
    %c0_i32_1 = arith.constant 0 : i32
    return %c0_i32, %c0_i32_0 : i32, i32
  }
  func.func @transform_2(%arg0: i32) -> (i32, i32) {
    %c0_i32 = arith.constant 0 : i32
    %c0_i32_0 = arith.constant 0 : i32
    %c0_i32_1 = arith.constant 0 : i32
    return %c0_i32, %c0_i32_0 : i32, i32
  }
  func.func @transform_3(%arg0: i32) -> (i32, i32, i32) {
    %c0_i32 = arith.constant 0 : i32
    %c0_i32_0 = arith.constant 0 : i32
    %c0_i32_1 = arith.constant 0 : i32
    return %arg0, %c0_i32, %c0_i32_0 : i32, i32, i32
  }
}

module attributes {stable_mosaic.version = 11 : i64} {
  func.func @conv_relu_stats_kernel(%arg0: i32, %arg1: memref<1x18x18x4xf32, #tpu.memory_space<vmem>>, %arg2: memref<36x128xf32, #tpu.memory_space<vmem>>, %arg3: memref<1x128xf32, #tpu.memory_space<vmem>>, %arg4: memref<1x256x128xf32, #tpu.memory_space<vmem>>, %arg5: memref<1x2x128xf32, #tpu.memory_space<vmem>>) attributes {dimension_semantics = [#tpu.dimension_semantics<parallel>], iteration_bounds = array<i64: 2>, scalar_prefetch = 0 : i64, scratch_operands = 0 : i64, tpu.core_type = #tpu.core_type<tc>, window_params = [{transform_indices = @transform_0, window_bounds = array<i64: 1, 18, 18, 4>}, {pipeline_mode = #tpu.pipeline_mode<synchronous>, transform_indices = @transform_1, window_bounds = array<i64: 36, 128>}, {pipeline_mode = #tpu.pipeline_mode<synchronous>, transform_indices = @transform_2, window_bounds = array<i64: 1, 128>}, {transform_indices = @transform_3, window_bounds = array<i64: 1, 256, 128>}, {transform_indices = @transform_4, window_bounds = array<i64: 1, 2, 128>}]} {
    %c0 = arith.constant 0 : index
    %c0_0 = arith.constant 0 : index
    %c0_1 = arith.constant 0 : index
    %c0_2 = arith.constant 0 : index
    %0 = vector.load %arg1[%c0, %c0_0, %c0_1, %c0_2] : memref<1x18x18x4xf32, #tpu.memory_space<vmem>>, vector<1x18x18x4xf32>
    %1 = vector.extract_strided_slice %0 {offsets = [0, 0, 0, 0], sizes = [1, 16, 16, 4], strides = [1, 1, 1, 1]} : vector<1x18x18x4xf32> to vector<1x16x16x4xf32>
    %2 = vector.shape_cast %1 : vector<1x16x16x4xf32> to vector<256x4xf32>
    %3 = vector.extract_strided_slice %0 {offsets = [0, 0, 1, 0], sizes = [1, 16, 16, 4], strides = [1, 1, 1, 1]} : vector<1x18x18x4xf32> to vector<1x16x16x4xf32>
    %4 = vector.shape_cast %3 : vector<1x16x16x4xf32> to vector<256x4xf32>
    %5 = vector.extract_strided_slice %0 {offsets = [0, 0, 2, 0], sizes = [1, 16, 16, 4], strides = [1, 1, 1, 1]} : vector<1x18x18x4xf32> to vector<1x16x16x4xf32>
    %6 = vector.shape_cast %5 : vector<1x16x16x4xf32> to vector<256x4xf32>
    %7 = vector.extract_strided_slice %0 {offsets = [0, 1, 0, 0], sizes = [1, 16, 16, 4], strides = [1, 1, 1, 1]} : vector<1x18x18x4xf32> to vector<1x16x16x4xf32>
    %8 = vector.shape_cast %7 : vector<1x16x16x4xf32> to vector<256x4xf32>
    %9 = vector.extract_strided_slice %0 {offsets = [0, 1, 1, 0], sizes = [1, 16, 16, 4], strides = [1, 1, 1, 1]} : vector<1x18x18x4xf32> to vector<1x16x16x4xf32>
    %10 = vector.shape_cast %9 : vector<1x16x16x4xf32> to vector<256x4xf32>
    %11 = vector.extract_strided_slice %0 {offsets = [0, 1, 2, 0], sizes = [1, 16, 16, 4], strides = [1, 1, 1, 1]} : vector<1x18x18x4xf32> to vector<1x16x16x4xf32>
    %12 = vector.shape_cast %11 : vector<1x16x16x4xf32> to vector<256x4xf32>
    %13 = vector.extract_strided_slice %0 {offsets = [0, 2, 0, 0], sizes = [1, 16, 16, 4], strides = [1, 1, 1, 1]} : vector<1x18x18x4xf32> to vector<1x16x16x4xf32>
    %14 = vector.shape_cast %13 : vector<1x16x16x4xf32> to vector<256x4xf32>
    %15 = vector.extract_strided_slice %0 {offsets = [0, 2, 1, 0], sizes = [1, 16, 16, 4], strides = [1, 1, 1, 1]} : vector<1x18x18x4xf32> to vector<1x16x16x4xf32>
    %16 = vector.shape_cast %15 : vector<1x16x16x4xf32> to vector<256x4xf32>
    %17 = vector.extract_strided_slice %0 {offsets = [0, 2, 2, 0], sizes = [1, 16, 16, 4], strides = [1, 1, 1, 1]} : vector<1x18x18x4xf32> to vector<1x16x16x4xf32>
    %18 = vector.shape_cast %17 : vector<1x16x16x4xf32> to vector<256x4xf32>
    %19 = tpu.concatenate %2, %4, %6, %8, %10, %12, %14, %16, %18 in 1 : vector<256x4xf32>, vector<256x4xf32>, vector<256x4xf32>, vector<256x4xf32>, vector<256x4xf32>, vector<256x4xf32>, vector<256x4xf32>, vector<256x4xf32>, vector<256x4xf32> -> vector<256x36xf32>
    %c0_3 = arith.constant 0 : index
    %c0_4 = arith.constant 0 : index
    %20 = vector.load %arg2[%c0_3, %c0_4] : memref<36x128xf32, #tpu.memory_space<vmem>>, vector<36x128xf32>
    %cst = arith.constant dense<0.000000e+00> : vector<256x128xf32>
    %21 = tpu.matmul %19, %20, %cst {dimension_numbers = #tpu.dot_dimension_numbers<[1], [0], [0], [1], [0, 0, 1, 1], [], []>} : vector<256x36xf32>, vector<36x128xf32>, vector<256x128xf32> -> vector<256x128xf32>
    %c0_5 = arith.constant 0 : index
    %c0_6 = arith.constant 0 : index
    %22 = vector.load %arg3[%c0_5, %c0_6] : memref<1x128xf32, #tpu.memory_space<vmem>>, vector<1x128xf32>
    %23 = vector.broadcast %22 : vector<1x128xf32> to vector<256x128xf32>
    %24 = arith.addf %21, %23 : vector<256x128xf32>
    %cst_7 = arith.constant 0.000000e+00 : f32
    %25 = vector.broadcast %cst_7 : f32 to vector<256x128xf32>
    %26 = arith.maximumf %24, %25 : vector<256x128xf32>
    %27 = vector.shape_cast %26 : vector<256x128xf32> to vector<1x256x128xf32>
    %c0_8 = arith.constant 0 : index
    %c0_9 = arith.constant 0 : index
    %c0_10 = arith.constant 0 : index
    %28 = vector.load %arg4[%c0_8, %c0_9, %c0_10] : memref<1x256x128xf32, #tpu.memory_space<vmem>>, vector<1x256x128xf32>
    tpu.vector_store %arg4[%c0_8, %c0_9, %c0_10], %27 {strides = array<i32>} : memref<1x256x128xf32, #tpu.memory_space<vmem>>, vector<1x256x128xf32>,
    %cst_11 = arith.constant dense<0.000000e+00> : vector<128xf32>
    %29 = vector.multi_reduction <add>, %26, %cst_11 [0] : vector<256x128xf32> to vector<128xf32>
    %30 = vector.shape_cast %29 : vector<128xf32> to vector<1x128xf32>
    %31 = arith.mulf %26, %26 : vector<256x128xf32>
    %cst_12 = arith.constant dense<0.000000e+00> : vector<128xf32>
    %32 = vector.multi_reduction <add>, %31, %cst_12 [0] : vector<256x128xf32> to vector<128xf32>
    %33 = vector.shape_cast %32 : vector<128xf32> to vector<1x128xf32>
    %34 = tpu.concatenate %30, %33 in 0 : vector<1x128xf32>, vector<1x128xf32> -> vector<2x128xf32>
    %35 = vector.shape_cast %34 : vector<2x128xf32> to vector<1x2x128xf32>
    %c0_13 = arith.constant 0 : index
    %c0_14 = arith.constant 0 : index
    %c0_15 = arith.constant 0 : index
    %36 = vector.load %arg5[%c0_13, %c0_14, %c0_15] : memref<1x2x128xf32, #tpu.memory_space<vmem>>, vector<1x2x128xf32>
    tpu.vector_store %arg5[%c0_13, %c0_14, %c0_15], %35 {strides = array<i32>} : memref<1x2x128xf32, #tpu.memory_space<vmem>>, vector<1x2x128xf32>,
    return
  }
  func.func @transform_0(%arg0: i32) -> (i32, i32, i32, i32) {
    %c0_i32 = arith.constant 0 : i32
    %c0_i32_0 = arith.constant 0 : i32
    %c0_i32_1 = arith.constant 0 : i32
    %c0_i32_2 = arith.constant 0 : i32
    return %arg0, %c0_i32, %c0_i32_0, %c0_i32_1 : i32, i32, i32, i32
  }
  func.func @transform_1(%arg0: i32) -> (i32, i32) {
    %c0_i32 = arith.constant 0 : i32
    %c0_i32_0 = arith.constant 0 : i32
    %c0_i32_1 = arith.constant 0 : i32
    return %c0_i32, %c0_i32_0 : i32, i32
  }
  func.func @transform_2(%arg0: i32) -> (i32, i32) {
    %c0_i32 = arith.constant 0 : i32
    %c0_i32_0 = arith.constant 0 : i32
    %c0_i32_1 = arith.constant 0 : i32
    return %c0_i32, %c0_i32_0 : i32, i32
  }
  func.func @transform_3(%arg0: i32) -> (i32, i32, i32) {
    %c0_i32 = arith.constant 0 : i32
    %c0_i32_0 = arith.constant 0 : i32
    %c0_i32_1 = arith.constant 0 : i32
    return %arg0, %c0_i32, %c0_i32_0 : i32, i32, i32
  }
  func.func @transform_4(%arg0: i32) -> (i32, i32, i32) {
    %c0_i32 = arith.constant 0 : i32
    %c0_i32_0 = arith.constant 0 : i32
    %c0_i32_1 = arith.constant 0 : i32
    return %arg0, %c0_i32, %c0_i32_0 : i32, i32, i32
  }
}

</mosaic_0001>

<bundles_post_ra>
// kernel: conv_block_forward.3
= control target key start
LH: loop header
LB: loop body
LE: loop exit
PB: predicated region body
PF: predicated region fallthrough
CT: control target
= control target key end

     0   :  { %s419_s12 = smov 0   ;;  %s578_s0 = inlined_call_operand.vmem [shape: f32[2,256,128], index: 0, kind: input, shape index: {}]   ;;  %s579_s1 = inlined_call_operand.vmem [shape: f32[1,128], index: 1, kind: input, shape index: {}]   ;;  %s580_s2 = inlined_call_operand.vmem [shape: f32[1,128], index: 2, kind: input, shape index: {}]   ;;  %s581_s3 = inlined_call_operand.vmem [shape: f32[2,256,128], index: 3, kind: output, shape index: {}]  }
   0x1 LB: > { %s368_s13 = sadd.s32 4294967295, %s397_s12   ;;  %p372_p0 = scmp.ge.s32.totalorder %s397_s12, 1  ;;  %s397_s12 = sphi %s419_s12, %s13_s12  }
   0x2   : > { %p137_p1 = scmp.lt.s32.totalorder %s397_s12, 3 }
   0x4   : > { %p138_p2 = pnand %p372_p0, %p137_p1 }
   0x5   : > { %p161_p3 = scmp.lt.s32.totalorder (!%p138_p2), %s368_s13, 1  ;;  %v430_v0 = vld [vmem:[%s579_s1] ss:$0 sm:$0xff] (!%p138_p2) }
   0x6   : > { %141 = sbr.rel (%p138_p2) target bundleno = 40 (0x28), region = 32  ;;  %v440_v1 = vld [vmem:[%s580_s2] ss:$0 sm:$0xff] (!%p138_p2) }
   0xd   : > { %s583_s13 = smov (!%p161_p3, %s368_s13), 1 }
   0xe   : > { %s381_s14 = sshll.u32 %s583_s13, 8 }
   0xf   : > { %s435_s19 = scalar_lea.vmem %s578_s0, %s381_s14  ;;  %s454_s24 = scalar_lea.vmem %s581_s3, %s381_s14 }
  0x10   : > { %v171_v2 = vld [vmem:[%s435_s19] sm:$0xff]  ;;  %v172_v3 = vld [vmem:[%s435_s19 + $0x8] sm:$0xff]  ;;  %v173_v4 = vld [vmem:[%s435_s19 + $0x10] sm:$0xff] }
  0x11   : > { %v210_v5 = vmul.f32 %v430_v0, %v171_v2  ;;  %v211_v6 = vmul.f32 %v430_v0, %v172_v3  ;;  %v212_v7 = vmul.f32 %v430_v0, %v173_v4  ;;  %v174_v8 = vld [vmem:[%s435_s19 + $0x18] sm:$0xff]  ;;  %v175_v9 = vld [vmem:[%s435_s19 + $0x20] sm:$0xff]  ;;  %v176_v10 = vld [vmem:[%s435_s19 + $0x28] sm:$0xff] }
  0x12   : > { %v213_v11 = vmul.f32 %v430_v0, %v174_v8  ;;  %v214_v12 = vmul.f32 %v430_v0, %v175_v9  ;;  %v215_v13 = vmul.f32 %v430_v0, %v176_v10  ;;  %v177_v14 = vld [vmem:[%s435_s19 + $0x30] sm:$0xff]  ;;  %v178_v15 = vld [vmem:[%s435_s19 + $0x38] sm:$0xff]  ;;  %v179_v16 = vld [vmem:[%s435_s19 + $0x40] sm:$0xff] }
  0x13   : > { %v249_v17 = vadd.f32 %v440_v1, %v210_v5  ;;  %v250_v18 = vadd.f32 %v440_v1, %v211_v6  ;;  %v251_v19 = vadd.f32 %v440_v1, %v212_v7  ;;  %v216_v20 = vmul.f32 %v430_v0, %v177_v14  ;;  %v180_v21 = vld [vmem:[%s435_s19 + $0x48] sm:$0xff]  ;;  %v181_v22 = vld [vmem:[%s435_s19 + $0x50] sm:$0xff]  ;;  %v182_v23 = vld [vmem:[%s435_s19 + $0x58] sm:$0xff] }
  0x14   : > { %v252_v24 = vadd.f32 %v440_v1, %v213_v11  ;;  %v253_v25 = vadd.f32 %v440_v1, %v214_v12  ;;  %v254_v26 = vadd.f32 %v440_v1, %v215_v13  ;;  %v217_v27 = vmul.f32 %v430_v0, %v178_v15  ;;  %v183_v28 = vld [vmem:[%s435_s19 + $0x60] sm:$0xff]  ;;  %v184_v29 = vld [vmem:[%s435_s19 + $0x68] sm:$0xff]  ;;  %v185_v30 = vld [vmem:[%s435_s19 + $0x70] sm:$0xff] }
  0x15   : > { %281 = vst [vmem:[%s454_s24] sm:$0xff] %v249_v17  ;;  %282 = vst [vmem:[%s454_s24 + $0x8] sm:$0xff] %v250_v18  ;;  %v255_v31 = vadd.f32 %v440_v1, %v216_v20  ;;  %v218_v32 = vmul.f32 %v430_v0, %v179_v16  ;;  %v219_v33 = vmul.f32 %v430_v0, %v180_v21  ;;  %v186_v35 = vld [vmem:[%s435_s19 + $0x78] sm:$0xff]  ;;  %v187_v40 = vld [vmem:[%s435_s19 + $0x80] sm:$0xff] }
  0x16   : > { %283 = vst [vmem:[%s454_s24 + $0x10] sm:$0xff] %v251_v19  ;;  %v220_v34 = vmul.f32 %v430_v0, %v181_v22  ;;  %284 = vst [vmem:[%s454_s24 + $0x18] sm:$0xff] %v252_v24  ;;  %v256_v36 = vadd.f32 %v440_v1, %v217_v27  ;;  %v221_v37 = vmul.f32 %v430_v0, %v182_v23  ;;  %v188_v41 = vld [vmem:[%s435_s19 + $0x88] sm:$0xff]  ;;  %v189_v42 = vld [vmem:[%s435_s19 + $0x90] sm:$0xff] }
  0x17   : > { %285 = vst [vmem:[%s454_s24 + $0x20] sm:$0xff] %v253_v25  ;;  %286 = vst [vmem:[%s454_s24 + $0x28] sm:$0xff] %v254_v26  ;;  %v222_v38 = vmul.f32 %v430_v0, %v183_v28  ;;  %v223_v39 = vmul.f32 %v430_v0, %v184_v29  ;;  %v257_v43 = vadd.f32 %v440_v1, %v218_v32  ;;  %v190_v47 = vld [vmem:[%s435_s19 + $0x98] sm:$0xff]  ;;  %v191_v48 = vld [vmem:[%s435_s19 + $0xa0] sm:$0xff] }
  0x18   : > { %287 = vst [vmem:[%s454_s24 + $0x30] sm:$0xff] %v255_v31  ;;  %v258_v44 = vadd.f32 %v440_v1, %v219_v33  ;;  %v259_v45 = vadd.f32 %v440_v1, %v220_v34  ;;  %v224_v46 = vmul.f32 %v430_v0, %v185_v30  ;;  %v192_v49 = vld [vmem:[%s435_s19 + $0xa8] sm:$0xff]  ;;  %288 = vst [vmem:[%s454_s24 + $0x38] sm:$0xff] %v256_v36  ;;  %v193_v54 = vld [vmem:[%s435_s19 + $0xb0] sm:$0xff] }
  0x19   : > { %v260_v50 = vadd.f32 %v440_v1, %v221_v37  ;;  %v261_v51 = vadd.f32 %v440_v1, %v222_v38  ;;  %v262_v52 = vadd.f32 %v440_v1, %v223_v39  ;;  %v225_v53 = vmul.f32 %v430_v0, %v186_v35  ;;  %289 = vst [vmem:[%s454_s24 + $0x40] sm:$0xff] %v257_v43  ;;  %v194_v59 = vld [vmem:[%s435_s19 + $0xb8] sm:$0xff]  ;;  %v195_v2 = vld [vmem:[%s435_s19 + $0xc0] sm:$0xff]  ;;  %v196_v3 = vld [vmem:[%s435_s19 + $0xc8] sm:$0xff] }
  0x1a   : > { %290 = vst [vmem:[%s454_s24 + $0x48] sm:$0xff] %v258_v44  ;;  %291 = vst [vmem:[%s454_s24 + $0x50] sm:$0xff] %v259_v45  ;;  %v263_v55 = vadd.f32 %v440_v1, %v224_v46  ;;  %v226_v56 = vmul.f32 %v430_v0, %v187_v40  ;;  %v227_v57 = vmul.f32 %v430_v0, %v188_v41  ;;  %v197_v4 = vld [vmem:[%s435_s19 + $0xd0] sm:$0xff]  ;;  %v198_v9 = vld [vmem:[%s435_s19 + $0xd8] sm:$0xff] }
  0x1b   : > { %v228_v58 = vmul.f32 %v430_v0, %v189_v42  ;;  %292 = vst [vmem:[%s454_s24 + $0x58] sm:$0xff] %v260_v50  ;;  %293 = vst [vmem:[%s454_s24 + $0x60] sm:$0xff] %v261_v51  ;;  %v264_v60 = vadd.f32 %v440_v1, %v225_v53  ;;  %v229_v61 = vmul.f32 %v430_v0, %v190_v47  ;;  %v199_v10 = vld [vmem:[%s435_s19 + $0xe0] sm:$0xff]  ;;  %v200_v11 = vld [vmem:[%s435_s19 + $0xe8] sm:$0xff] }
  0x1c   : > { %294 = vst [vmem:[%s454_s24 + $0x68] sm:$0xff] %v262_v52  ;;  %v230_v62 = vmul.f32 %v430_v0, %v191_v48  ;;  %v231_v63 = vmul.f32 %v430_v0, %v192_v49  ;;  %295 = vst [vmem:[%s454_s24 + $0x70] sm:$0xff] %v263_v55  ;;  %v265_v5 = vadd.f32 %v440_v1, %v226_v56  ;;  %v201_v16 = vld [vmem:[%s435_s19 + $0xf0] sm:$0xff]  ;;  %v202_v21 = vld [vmem:[%s435_s19 + $0xf8] sm:$0xff] }
  0x1d   : > { %v266_v6 = vadd.f32 %v440_v1, %v227_v57  ;;  %v267_v7 = vadd.f32 %v440_v1, %v228_v58  ;;  %v232_v8 = vmul.f32 %v430_v0, %v193_v54  ;;  %296 = vst [vmem:[%s454_s24 + $0x78] sm:$0xff] %v264_v60  ;;  %v268_v12 = vadd.f32 %v440_v1, %v229_v61 }
  0x1e   : > { %v269_v13 = vadd.f32 %v440_v1, %v230_v62  ;;  %v270_v14 = vadd.f32 %v440_v1, %v231_v63  ;;  %v233_v15 = vmul.f32 %v430_v0, %v194_v59  ;;  %297 = vst [vmem:[%s454_s24 + $0x80] sm:$0xff] %v265_v5  ;;  %v234_v18 = vmul.f32 %v430_v0, %v195_v2 }
  0x1f   : > { %298 = vst [vmem:[%s454_s24 + $0x88] sm:$0xff] %v266_v6  ;;  %299 = vst [vmem:[%s454_s24 + $0x90] sm:$0xff] %v267_v7  ;;  %v271_v17 = vadd.f32 %v440_v1, %v232_v8  ;;  %v235_v19 = vmul.f32 %v430_v0, %v196_v3  ;;  %v236_v20 = vmul.f32 %v430_v0, %v197_v4 }
  0x20   : > { %300 = vst [vmem:[%s454_s24 + $0x98] sm:$0xff] %v268_v12  ;;  %301 = vst [vmem:[%s454_s24 + $0xa0] sm:$0xff] %v269_v13  ;;  %v272_v22 = vadd.f32 %v440_v1, %v233_v15  ;;  %v237_v23 = vmul.f32 %v430_v0, %v198_v9  ;;  %v238_v24 = vmul.f32 %v430_v0, %v199_v10 }
  0x21   : > { %302 = vst [vmem:[%s454_s24 + $0xa8] sm:$0xff] %v270_v14  ;;  %v239_v25 = vmul.f32 %v430_v0, %v200_v11  ;;  %303 = vst [vmem:[%s454_s24 + $0xb0] sm:$0xff] %v271_v17  ;;  %v273_v26 = vadd.f32 %v440_v1, %v234_v18  ;;  %v274_v27 = vadd.f32 %v440_v1, %v235_v19 }
  0x22   : > { %v275_v28 = vadd.f32 %v440_v1, %v236_v20  ;;  %v240_v29 = vmul.f32 %v430_v0, %v201_v16  ;;  %304 = vst [vmem:[%s454_s24 + $0xb8] sm:$0xff] %v272_v22  ;;  %v276_v30 = vadd.f32 %v440_v1, %v237_v23  ;;  %v277_v31 = vadd.f32 %v440_v1, %v238_v24 }
  0x23   : > { %v278_v32 = vadd.f32 %v440_v1, %v239_v25  ;;  %v241_v33 = vmul.f32 %v430_v0, %v202_v21  ;;  %305 = vst [vmem:[%s454_s24 + $0xc0] sm:$0xff] %v273_v26  ;;  %306 = vst [vmem:[%s454_s24 + $0xc8] sm:$0xff] %v274_v27 }
  0x24   : > { %307 = vst [vmem:[%s454_s24 + $0xd0] sm:$0xff] %v275_v28  ;;  %v279_v34 = vadd.f32 %v440_v1, %v240_v29  ;;  %308 = vst [vmem:[%s454_s24 + $0xd8] sm:$0xff] %v276_v30 }
  0x25   : > { %309 = vst [vmem:[%s454_s24 + $0xe0] sm:$0xff] %v277_v31  ;;  %310 = vst [vmem:[%s454_s24 + $0xe8] sm:$0xff] %v278_v32  ;;  %v280_v35 = vadd.f32 %v440_v1, %v241_v33 }
  0x26   : > { %311 = vst [vmem:[%s454_s24 + $0xf0] sm:$0xff] %v279_v34 }
  0x27   : > { %312 = vst [vmem:[%s454_s24 + $0xf8] sm:$0xff] %v280_v35 }
  0x28 PF: > { %s13_s12 = sadd.s32 1, %s397_s12  }
  0x29   : > { %p10_p4 = scmp.ge.s32.totalorder %s13_s12, 4  }
  0x2b   :  { %12 = sbr.rel (!%p10_p4) target bundleno = 1 (0x1), region = 62 }

// kernel: conv_block_forward.2
= control target key start
LH: loop header
LB: loop body
LE: loop exit
PB: predicated region body
PF: predicated region fallthrough
CT: control target
= control target key end

     0   :  { %s2359_s15 = smov 0   ;;  %s3954_s0 = inlined_call_operand.vmem [shape: f32[2,18,18,4], index: 0, kind: input, shape index: {}]   ;;  %s3955_s1 = inlined_call_operand.vmem [shape: f32[36,128], index: 1, kind: input, shape index: {}]   ;;  %s3956_s2 = inlined_call_operand.vmem [shape: f32[1,128], index: 2, kind: input, shape index: {}]   ;;  %s3957_s3 = inlined_call_operand.vmem [shape: f32[2,256,128], index: 3, kind: output, shape index: {0}]   ;;  %s3958_s4 = inlined_call_operand.vmem [shape: f32[2,2,128], index: 4, kind: output, shape index: {1}]  }
   0x1 LB: > { %s2128_s16 = sadd.s32 4294967295, %s2324_s15   ;;  %p2132_p0 = scmp.ge.s32.totalorder %s2324_s15, 1  ;;  %s2324_s15 = sphi %s2359_s15, %s15_s15  }
   0x2   : > { %p165_p1 = scmp.lt.s32.totalorder %s2324_s15, 3 }
   0x4   : > { %p166_p2 = pnand %p2132_p0, %p165_p1 }
   0x6   : > { %169 = sbr.rel (%p166_p2) target bundleno = 886 (0x376), region = 32 }
   0xd   : > { %p195_p3 = scmp.lt.s32.totalorder %s2128_s16, 1  ;;  %vm311_vm0 = vcmask 1046528   ;;  %s2326_s21 = smov 4   ;;  %vm392_vm1 = vcmask 1045504   ;;  %vm1640_vm2 = vcmask 1043456   ;;  %vm1267_vm3 = vcmask 31744  }
   0xe   : > { %s2327_s22 = smov 8   ;;  %s2328_s23 = smov 12   ;;  %vm1300_vm4 = vcmask 64512   ;;  %vm1333_vm5 = vcmask 97280   ;;  %vm1366_vm6 = vcmask 130048   ;;  %vm1399_vm7 = vcmask 162816  }
   0xf   : > { %s4165_s16 = smov (!%p195_p3, %s2128_s16), 1  ;;  %s2329_s24 = smov 16   ;;  %vm1432_vm8 = vcmask 195584   ;;  %vm1465_vm9 = vcmask 228352   ;;  %vm1498_vm10 = vcmask 261120   ;;  %vm1543_vm11 = vcmask 293888  }
  0x10   : > { %s2283_s17 = smul.u32 432, %s4165_s16  ;;  %s2330_s29 = smov 20   ;;  %vm2039_vm12 = vcmask 1040384  }
  0x11   : > { %s2331_s8 = smov 24   ;;  %s2332_s11 = smov 28  }
  0x12   : > { %s2373_s20 = scalar_lea.vmem %s3954_s0, %s2283_s17  ;;  %s2333_s12 = smov 32  }
  0x13   : > { %v2376_v0 = vld [vmem:[%s2373_s20 + $0x18] sm:$0xff]  ;;  %v2379_v1 = vld [vmem:[%s2373_s20 + $0x20] sm:$0xff]  ;;  %v2387_v5 = vld [vmem:[%s2373_s20 + $0x8] sm:$0xff]  ;;  %s2173_s17 = sshll.u32 %s4165_s16, 8 }
  0x14   : > { %v2382_v2 = vld [vmem:[%s2373_s20] sm:$0xff]  ;;  %v317_v3 = vrot.slane %v2376_v0, 1  ;;  %v318_v4 = vrot.slane %v2379_v1, 1  ;;  %v2391_v7 = vld [vmem:[%s2373_s20 + $0x28] sm:$0x3]  ;;  %v313_v8 = vrot.slane %v2387_v5, 1 }
  0x15   : > { %4048 = vst [vmem:[#allocation2_spill] sm:$0xff] %v2382_v2  ;;  %v312_v6 = vrot.slane %v2382_v2, 1  ;;  %v320_v9 = vrot.slane %v2391_v7, 1  ;;  %v2396_v10 = vld [vmem:[%s2373_s20 + $0x10] sm:$0x3]  ;;  %v2399_v11 = vld [vmem:[%s2373_s20 + $0x38] sm:$0xff] }
  0x16   : > { %v2402_v12 = vsel %vm311_vm0, %v317_v3, %v318_v4  ;;  %v315_v13 = vrot.slane %v2396_v10, 1  ;;  %v2406_v14 = vld [vmem:[%s2373_s20 + $0x40] sm:$0x3]  ;;  %v2409_v15 = vld [vmem:[%s2373_s20 + $0x30] sm:$0xff]  ;;  %v323_v18 = vrot.slane %v2399_v11, 1  ;;  %v2429_v24 = vld [vmem:[%s2373_s20 + $0x48] sm:$0xff] }
  0x17   : > { %503 = vrot.lane.b32.xlu1 %v2402_v12, %s2326_s21  ;;  %v314_v16 = vsel %vm311_vm0, %v312_v6, %v313_v8  ;;  %v2416_v17 = vsel %vm311_vm0, %v318_v4, %v320_v9  ;;  %v325_v19 = vrot.slane %v2406_v14, 1  ;;  %v322_v21 = vrot.slane %v2409_v15, 1  ;;  %v2423_v22 = vld [vmem:[%s2373_s20 + $0x50] sm:$0xff]  ;;  %v2426_v23 = vld [vmem:[%s2373_s20 + $0x58] sm:$0x3]  ;;  %v2444_v30 = vld [vmem:[%s2373_s20 + $0x68] sm:$0xff] }
  0x18   : > { %499 = vrot.lane.b32.xlu0 %v314_v16, %s2326_s21  ;;  %v316_v20 = vsel %vm311_vm0, %v313_v8, %v315_v13  ;;  %v328_v26 = vrot.slane %v2423_v22, 1  ;;  %v330_v27 = vrot.slane %v2426_v23, 1  ;;  %v327_v29 = vrot.slane %v2429_v24, 1  ;;  %v2447_v31 = vld [vmem:[%s2373_s20 + $0x70] sm:$0x3]  ;;  %v2450_v32 = vld [vmem:[%s2373_s20 + $0x60] sm:$0xff] }
  0x19   : > { %v2435_v25 = vsel %vm311_vm0, %v323_v18, %v325_v19  ;;  %v2440_v28 = vsel %vm311_vm0, %v322_v21, %v323_v18  ;;  %v333_v34 = vrot.slane %v2444_v30, 1  ;;  %v335_v35 = vrot.slane %v2447_v31, 1  ;;  %v2466_v38 = vld [vmem:[%s2373_s20 + $0x80] sm:$0xff]  ;;  %v2469_v39 = vld [vmem:[%s2373_s20 + $0x88] sm:$0x3]  ;;  %v2472_v40 = vld [vmem:[%s2373_s20 + $0x78] sm:$0xff] }
  0x1a   : > { %v2457_v33 = vsel %vm311_vm0, %v328_v26, %v330_v27  ;;  %v2462_v36 = vsel %vm311_vm0, %v327_v29, %v328_v26  ;;  %v332_v37 = vrot.slane %v2450_v32, 1  ;;  %v338_v42 = vrot.slane %v2466_v38, 1  ;;  %v2488_v46 = vld [vmem:[%s2373_s20 + $0x98] sm:$0xff]  ;;  %v2491_v47 = vld [vmem:[%s2373_s20 + $0xa0] sm:$0x3]  ;;  %v2494_v48 = vld [vmem:[%s2373_s20 + $0x90] sm:$0xff] }
  0x1b   : > { %505 = vrot.lane.b32.xlu1 %v2416_v17, %s2326_s21  ;;  %4049 = vst [vmem:[#allocation3_spill] sm:$0xff] %v2457_v33  ;;  %v2479_v41 = vsel %vm311_vm0, %v333_v34, %v335_v35  ;;  %v340_v43 = vrot.slane %v2469_v39, 1  ;;  %v337_v45 = vrot.slane %v2472_v40, 1  ;;  %v343_v50 = vrot.slane %v2488_v46, 1  ;;  %v2510_v54 = vld [vmem:[%s2373_s20 + $0xb0] sm:$0xff]  ;;  %v2516_v56 = vld [vmem:[%s2373_s20 + $0xa8] sm:$0xff] }
  0x1c   : > { %501 = vrot.lane.b32.xlu0 %v316_v20, %s2326_s21  ;;  %4050 = vst [vmem:[#allocation4_spill] sm:$0xff] %v2479_v41  ;;  %v2484_v44 = vsel %vm311_vm0, %v332_v37, %v333_v34  ;;  %v345_v51 = vrot.slane %v2491_v47, 1  ;;  %v342_v53 = vrot.slane %v2494_v48, 1  ;;  %v2513_v55 = vld [vmem:[%s2373_s20 + $0xb8] sm:$0x3]  ;;  %v348_v58 = vrot.slane %v2510_v54, 1 }
  0x1d   : > { %4051 = vst [vmem:[#allocation5_spill] sm:$0xff] %v2484_v44  ;;  %v2501_v49 = vsel %vm311_vm0, %v338_v42, %v340_v43  ;;  %v2506_v52 = vsel %vm311_vm0, %v337_v45, %v338_v42  ;;  %v350_v59 = vrot.slane %v2513_v55, 1  ;;  %v347_v61 = vrot.slane %v2516_v56, 1  ;;  %v2532_v62 = vld [vmem:[%s2373_s20 + $0xc8] sm:$0xff]  ;;  %v2535_v63 = vld [vmem:[%s2373_s20 + $0xd0] sm:$0x3] }
  0x1e   : > { %4052 = vst [vmem:[#allocation6_spill] sm:$0xff] %v2501_v49  ;;  %4053 = vst [vmem:[#allocation7_spill] sm:$0xff] %v2506_v52  ;;  %v2523_v57 = vsel %vm311_vm0, %v343_v50, %v345_v51  ;;  %v2528_v60 = vsel %vm311_vm0, %v342_v53, %v343_v50  ;;  %v2538_v3 = vld [vmem:[%s2373_s20 + $0xc0] sm:$0xff]  ;;  %v353_v6 = vrot.slane %v2532_v62, 1  ;;  %v355_v8 = vrot.slane %v2535_v63, 1  ;;  %v2560_v19 = vld [vmem:[%s2373_s20 + $0xd8] sm:$0xff] }
  0x1f   : > { %509 = vrot.lane.b32.xlu1 %v2435_v25, %s2326_s21  ;;  %4054 = vst [vmem:[#allocation8_spill] sm:$0xff] %v2523_v57  ;;  %4055 = vst [vmem:[#allocation9_spill] sm:$0xff] %v2528_v60  ;;  %v2545_v4 = vsel %vm311_vm0, %v348_v58, %v350_v59  ;;  %v2550_v9 = vsel %vm311_vm0, %v347_v61, %v348_v58  ;;  %v352_v13 = vrot.slane %v2538_v3, 1  ;;  %v2554_v16 = vld [vmem:[%s2373_s20 + $0xe0] sm:$0xff]  ;;  %v2557_v18 = vld [vmem:[%s2373_s20 + $0xe8] sm:$0x3] }
  0x20   : > { %507 = vrot.lane.b32.xlu0 %v2440_v28, %s2326_s21  ;;  %4056 = vst [vmem:[#allocation10_spill] sm:$0xff] %v2545_v4  ;;  %4057 = vst [vmem:[#allocation11_spill] sm:$0xff] %v2550_v9  ;;  %v2567_v20 = vsel %vm311_vm0, %v353_v6, %v355_v8  ;;  %v358_v21 = vrot.slane %v2554_v16, 1  ;;  %v360_v26 = vrot.slane %v2557_v18, 1  ;;  %v357_v29 = vrot.slane %v2560_v19, 1  ;;  %v2576_v34 = vld [vmem:[%s2373_s20 + $0xf8] sm:$0xff] }
  0x21   : > { %4058 = vst [vmem:[#allocation12_spill] sm:$0xff] %v2567_v20  ;;  %v2572_v27 = vsel %vm311_vm0, %v352_v13, %v353_v6  ;;  %v2579_v35 = vld [vmem:[%s2373_s20 + $0x100] sm:$0x3]  ;;  %v2582_v37 = vld [vmem:[%s2373_s20 + $0xf0] sm:$0xff]  ;;  %v363_v43 = vrot.slane %v2576_v34, 1  ;;  %v2604_v59 = vld [vmem:[%s2373_s20 + $0x108] sm:$0xff] }
  0x22   : > { %4059 = vst [vmem:[#allocation13_spill] sm:$0xff] %v2572_v27  ;;  %v2589_v42 = vsel %vm311_vm0, %v358_v21, %v360_v26  ;;  %v365_v45 = vrot.slane %v2579_v35, 1  ;;  %v2594_v50 = vsel %vm311_vm0, %v357_v29, %v358_v21  ;;  %v362_v51 = vrot.slane %v2582_v37, 1  ;;  %v2598_v53 = vld [vmem:[%s2373_s20 + $0x110] sm:$0xff]  ;;  %v2601_v58 = vld [vmem:[%s2373_s20 + $0x118] sm:$0x3] }
  0x23   : > { %513 = vrot.lane.b32.xlu1 %v2457_v33, %s2326_s21  ;;  %4060 = vst [vmem:[#allocation14_spill] sm:$0xff] %v2589_v42  ;;  %4061 = vst [vmem:[#allocation15_spill] sm:$0xff] %v2594_v50  ;;  %v368_v6 = vrot.slane %v2598_v53, 1  ;;  %v370_v8 = vrot.slane %v2601_v58, 1  ;;  %v367_v21 = vrot.slane %v2604_v59, 1  ;;  %v2620_v26 = vld [vmem:[%s2373_s20 + $0x128] sm:$0xff] }
  0x24   : > { %511 = vrot.lane.b32.xlu0 %v2462_v36, %s2326_s21  ;;  %v2611_v61 = vsel %vm311_vm0, %v363_v43, %v365_v45  ;;  %v2616_v13 = vsel %vm311_vm0, %v362_v51, %v363_v43  ;;  %v2623_v29 = vld [vmem:[%s2373_s20 + $0x130] sm:$0x3]  ;;  %v373_v43 = vrot.slane %v2620_v26, 1 }
  0x25   : > { %4062 = vst [vmem:[#allocation16_spill] sm:$0xff] %v2611_v61  ;;  %4063 = vst [vmem:[#allocation17_spill] sm:$0xff] %v2616_v13  ;;  %v2633_v45 = vsel %vm311_vm0, %v368_v6, %v370_v8  ;;  %v375_v51 = vrot.slane %v2623_v29, 1 }
  0x26   : > { %4064 = vst [vmem:[#allocation18_spill] sm:$0xff] %v2633_v45 }
  0x27   : > { %517 = vrot.lane.b32.xlu1 %v2479_v41, %s2326_s21  ;;  %v2655_v8 = vsel %vm311_vm0, %v373_v43, %v375_v51  ;;  %v2689_v41 = vld [vmem:[%s2373_s20 + $0x178] sm:$0x3] }
  0x28   : > { %515 = vrot.lane.b32.xlu0 %v2484_v44, %s2326_s21  ;;  %4066 = vst [vmem:[#allocation20_spill] sm:$0xff] %v2655_v8 }
  0x2b   : > { %521 = vrot.lane.b32.xlu1 %v2501_v49, %s2326_s21 }
  0x2c   : > { %519 = vrot.lane.b32.xlu0 %v2506_v52, %s2326_s21  ;;  %v2686_v52 = vld [vmem:[%s2373_s20 + $0x170] sm:$0xff] }
  0x2f   : > { %525 = vrot.lane.b32.xlu1 %v2523_v57, %s2326_s21  ;;  %v2664_v57 = vld [vmem:[%s2373_s20 + $0x158] sm:$0xff] }
  0x30   : > { %523 = vrot.lane.b32.xlu0 %v2528_v60, %s2326_s21 }
  0x33   : > { %529 = vrot.lane.b32.xlu1 %v2545_v4, %s2326_s21 }
  0x34   : > { %527 = vrot.lane.b32.xlu0 %v2550_v9, %s2326_s21 }
  0x37   : > { %533 = vrot.lane.b32.xlu1 %v2567_v20, %s2326_s21 }
  0x38   : > { %531 = vrot.lane.b32.xlu0 %v2572_v27, %s2326_s21  ;;  %v2642_v27 = vld [vmem:[%s2373_s20 + $0x140] sm:$0xff] }
  0x3b   : > { %537 = vrot.lane.b32.xlu1 %v2589_v42, %s2326_s21  ;;  %v2626_v42 = vld [vmem:[%s2373_s20 + $0x120] sm:$0xff] }
  0x3c   : > { %535 = vrot.lane.b32.xlu0 %v2594_v50, %s2326_s21  ;;  %v2638_v50 = vsel %vm311_vm0, %v367_v21, %v368_v6  ;;  %v372_v20 = vrot.slane %v2626_v42, 1  ;;  %v378_v6 = vrot.slane %v2642_v27, 1 }
  0x3d   : > { %4065 = vst [vmem:[#allocation19_spill] sm:$0xff] %v2638_v50 }
  0x3e   : > { %v2660_v4 = vsel %vm311_vm0, %v372_v20, %v373_v43  ;;  %v383_v20 = vrot.slane %v2664_v57, 1 }
  0x3f   : > { %541 = vrot.lane.b32.xlu1 %v2611_v61, %s2326_s21  ;;  %v2645_v61 = vld [vmem:[%s2373_s20 + $0x148] sm:$0x3]  ;;  %4067 = vst [vmem:[#allocation21_spill] sm:$0xff] %v2660_v4 }
  0x40   : > { %539 = vrot.lane.b32.xlu0 %v2616_v13, %s2326_s21  ;;  %v2648_v13 = vld [vmem:[%s2373_s20 + $0x138] sm:$0xff]  ;;  %v380_v21 = vrot.slane %v2645_v61, 1 }
  0x41   : > { %v377_v9 = vrot.slane %v2648_v13, 1 }
  0x42   : > { %v2677_v51 = vsel %vm311_vm0, %v378_v6, %v380_v21 }
  0x43   : > { %545 = vrot.lane.b32.xlu1 %v2633_v45, %s2326_s21  ;;  %v2667_v45 = vld [vmem:[%s2373_s20 + $0x160] sm:$0x3]  ;;  %4068 = vst [vmem:[#allocation22_spill] sm:$0xff] %v2677_v51  ;;  %v2682_v60 = vsel %vm311_vm0, %v377_v9, %v378_v6  ;;  %v388_v9 = vrot.slane %v2686_v52, 1  ;;  %v390_v6 = vrot.slane %v2689_v41, 1 }
  0x44   : > { %543 = vrot.lane.b32.xlu0 %v2638_v50, %s2326_s21  ;;  %v2670_v50 = vld [vmem:[%s2373_s20 + $0x150] sm:$0xff]  ;;  %v385_v43 = vrot.slane %v2667_v45, 1  ;;  %4069 = vst [vmem:[#allocation23_spill] sm:$0xff] %v2682_v60 }
  0x45   : > { %v382_v49 = vrot.slane %v2670_v50, 1 }
  0x46   : > { %v2699_v21 = vsel %vm311_vm0, %v383_v20, %v385_v43  ;;  %v394_v43 = vrot.slane %v2387_v5, 2  ;;  %v401_v5 = vrot.slane %v2391_v7, 2  ;;  %v403_v7 = vrot.slane %v2409_v15, 2 }
  0x47   : > { %549 = vrot.lane.b32.xlu1 %v2655_v8, %s2326_s21  ;;  %v2692_v8 = vld [vmem:[%s2373_s20 + $0x168] sm:$0xff]  ;;  %4070 = vst [vmem:[#allocation24_spill] sm:$0xff] %v2699_v21 }
  0x48   : > { %547 = vrot.lane.b32.xlu0 %v2660_v4, %s2326_s21  ;;  %v2704_v4 = vsel %vm311_vm0, %v382_v49, %v383_v20  ;;  %v387_v44 = vrot.slane %v2692_v8, 1  ;;  %v393_v49 = vrot.slane %v2382_v2, 2  ;;  %v436_v2 = vrot.slane %v2535_v63, 2 }
  0x49   : > { %4071 = vst [vmem:[#allocation25_spill] sm:$0xff] %v2704_v4 }
  0x4a   : > { %v2717_v33 = vsel %vm311_vm0, %v387_v44, %v388_v9  ;;  %v398_v44 = vrot.slane %v2376_v0, 2 }
  0x4b   : > { %553 = vrot.lane.b32.xlu1 %v2677_v51, %s2326_s21  ;;  %v2712_v51 = vsel %vm311_vm0, %v388_v9, %v390_v6  ;;  %4073 = vst [vmem:[#allocation27_spill] sm:$0xff] %v2717_v33  ;;  %v399_v6 = vrot.slane %v2379_v1, 2 }
  0x4c   : > { %551 = vrot.lane.b32.xlu0 %v2682_v60, %s2326_s21  ;;  %4072 = vst [vmem:[#allocation26_spill] sm:$0xff] %v2712_v51  ;;  %v396_v60 = vrot.slane %v2396_v10, 2  ;;  %v395_v10 = vsel %vm392_vm1, %v393_v49, %v394_v43  ;;  %v409_v49 = vrot.slane %v2423_v22, 2 }
  0x4d   : > { %v2732_v9 = vsel %vm392_vm1, %v399_v6, %v401_v5 }
  0x4e   : > { %v397_v20 = vsel %vm392_vm1, %v394_v43, %v396_v60  ;;  %v406_v60 = vrot.slane %v2406_v14, 2 }
  0x4f   : > { %557 = vrot.lane.b32.xlu1 %v2699_v21, %s2326_s21  ;;  %v426_v21 = vrot.slane %v2491_v47, 2 }
  0x50   : > { %555 = vrot.lane.b32.xlu0 %v2704_v4, %s2326_s21  ;;  %v431_v4 = vrot.slane %v2513_v55, 2 }
  0x53   : > { %561 = vrot.lane.b32.xlu1 %v2712_v51, %s2326_s21  ;;  %v404_v51 = vrot.slane %v2399_v11, 2 }
  0x54   : > { %559 = vrot.lane.b32.xlu0 %v2717_v33, %s2326_s21  ;;  %v2737_v33 = vsel %vm392_vm1, %v398_v44, %v399_v6  ;;  %v408_v6 = vrot.slane %v2429_v24, 2  ;;  %v416_v44 = vrot.slane %v2447_v31, 2  ;;  %s2136_s21 = sshll.u32 %s4165_s16, 1 }
  0x55   : > { %v2745_v43 = vsel %vm392_vm1, %v404_v51, %v406_v60  ;;  %v2750_v14 = vsel %vm392_vm1, %v403_v7, %v404_v51  ;;  %v413_v51 = vrot.slane %v2450_v32, 2  ;;  %v419_v7 = vrot.slane %v2466_v38, 2 }
  0x57   : > { %597 = vrot.lane.b32.xlu1 %v397_v20, %s2327_s22  ;;  %v411_v20 = vrot.slane %v2426_v23, 2  ;;  %v2763_v23 = vsel %vm392_vm1, %v408_v6, %v409_v49 }
  0x58   : > { %595 = vrot.lane.b32.xlu0 %v395_v10, %s2327_s22  ;;  %v414_v10 = vrot.slane %v2444_v30, 2 }
  0x59   : > { %v2758_v5 = vsel %vm392_vm1, %v409_v49, %v411_v20  ;;  %v421_v20 = vrot.slane %v2469_v39, 2  ;;  %v418_v49 = vrot.slane %v2472_v40, 2 }
  0x5a   : > { %v2771_v60 = vsel %vm392_vm1, %v414_v10, %v416_v44  ;;  %v2776_v31 = vsel %vm392_vm1, %v413_v51, %v414_v10  ;;  %v424_v44 = vrot.slane %v2488_v46, 2  ;;  %v423_v10 = vrot.slane %v2494_v48, 2 }
  0x5b   : > { %601 = vrot.lane.b32.xlu1 %v2732_v9, %s2327_s22  ;;  %v2784_v6 = vsel %vm392_vm1, %v419_v7, %v421_v20  ;;  %v2789_v39 = vsel %vm392_vm1, %v418_v49, %v419_v7  ;;  %v429_v20 = vrot.slane %v2510_v54, 2  ;;  %v428_v7 = vrot.slane %v2516_v56, 2 }
  0x5c   : > { %599 = vrot.lane.b32.xlu0 %v2737_v33, %s2327_s22  ;;  %v2797_v51 = vsel %vm392_vm1, %v424_v44, %v426_v21  ;;  %v2802_v47 = vsel %vm392_vm1, %v423_v10, %v424_v44  ;;  %v434_v21 = vrot.slane %v2532_v62, 2  ;;  %v433_v44 = vrot.slane %v2538_v3, 2 }
  0x5d   : > { %4074 = vst [vmem:[#allocation28_spill] sm:$0xff] %v2797_v51  ;;  %v2810_v49 = vsel %vm392_vm1, %v429_v20, %v431_v4  ;;  %v2815_v55 = vsel %vm392_vm1, %v428_v7, %v429_v20  ;;  %v439_v4 = vrot.slane %v2554_v16, 2  ;;  %v438_v20 = vrot.slane %v2560_v19, 2 }
  0x5e   : > { %4075 = vst [vmem:[#allocation29_spill] sm:$0xff] %v2810_v49  ;;  %4076 = vst [vmem:[#allocation30_spill] sm:$0xff] %v2815_v55  ;;  %v2823_v10 = vsel %vm392_vm1, %v434_v21, %v436_v2  ;;  %v2828_v63 = vsel %vm392_vm1, %v433_v44, %v434_v21  ;;  %v444_v2 = vrot.slane %v2576_v34, 2  ;;  %v443_v21 = vrot.slane %v2582_v37, 2 }
  0x5f   : > { %605 = vrot.lane.b32.xlu1 %v2745_v43, %s2327_s22  ;;  %4077 = vst [vmem:[#allocation31_spill] sm:$0xff] %v2823_v10  ;;  %4078 = vst [vmem:[#allocation32_spill] sm:$0xff] %v2828_v63 }
  0x60   : > { %603 = vrot.lane.b32.xlu0 %v2750_v14, %s2327_s22 }
  0x63   : > { %609 = vrot.lane.b32.xlu1 %v2758_v5, %s2327_s22 }
  0x64   : > { %607 = vrot.lane.b32.xlu0 %v2763_v23, %s2327_s22 }
  0x67   : > { %613 = vrot.lane.b32.xlu1 %v2771_v60, %s2327_s22 }
  0x68   : > { %611 = vrot.lane.b32.xlu0 %v2776_v31, %s2327_s22 }
  0x6b   : > { %617 = vrot.lane.b32.xlu1 %v2784_v6, %s2327_s22 }
  0x6c   : > { %615 = vrot.lane.b32.xlu0 %v2789_v39, %s2327_s22 }
  0x6f   : > { %621 = vrot.lane.b32.xlu1 %v2797_v51, %s2327_s22  ;;  %v441_v51 = vrot.slane %v2557_v18, 2  ;;  %v2841_v18 = vsel %vm392_vm1, %v438_v20, %v439_v4 }
  0x70   : > { %619 = vrot.lane.b32.xlu0 %v2802_v47, %s2327_s22  ;;  %4080 = vst [vmem:[#allocation34_spill] sm:$0xff] %v2841_v18 }
  0x71   : > { %v2836_v7 = vsel %vm392_vm1, %v439_v4, %v441_v51  ;;  %v449_v51 = vrot.slane %v2598_v53, 2  ;;  %v448_v4 = vrot.slane %v2604_v59, 2 }
  0x72   : > { %4079 = vst [vmem:[#allocation33_spill] sm:$0xff] %v2836_v7 }
  0x73   : > { %625 = vrot.lane.b32.xlu1 %v2810_v49, %s2327_s22  ;;  %v446_v49 = vrot.slane %v2579_v35, 2  ;;  %v2854_v35 = vsel %vm392_vm1, %v443_v21, %v444_v2 }
  0x74   : > { %623 = vrot.lane.b32.xlu0 %v2815_v55, %s2327_s22  ;;  %4082 = vst [vmem:[#allocation36_spill] sm:$0xff] %v2854_v35 }
  0x75   : > { %v2849_v44 = vsel %vm392_vm1, %v444_v2, %v446_v49  ;;  %v454_v49 = vrot.slane %v2620_v26, 2  ;;  %v453_v2 = vrot.slane %v2626_v42, 2 }
  0x76   : > { %4081 = vst [vmem:[#allocation35_spill] sm:$0xff] %v2849_v44 }
  0x77   : > { %629 = vrot.lane.b32.xlu1 %v2823_v10, %s2327_s22  ;;  %v451_v10 = vrot.slane %v2601_v58, 2  ;;  %v2867_v58 = vsel %vm392_vm1, %v448_v4, %v449_v51 }
  0x78   : > { %627 = vrot.lane.b32.xlu0 %v2828_v63, %s2327_s22  ;;  %4084 = vst [vmem:[#allocation38_spill] sm:$0xff] %v2867_v58 }
  0x79   : > { %v2862_v20 = vsel %vm392_vm1, %v449_v51, %v451_v10  ;;  %v459_v10 = vrot.slane %v2642_v27, 2  ;;  %v458_v51 = vrot.slane %v2648_v13, 2 }
  0x7a   : > { %4083 = vst [vmem:[#allocation37_spill] sm:$0xff] %v2862_v20 }
  0x7b   : > { %633 = vrot.lane.b32.xlu1 %v2836_v7, %s2327_s22  ;;  %v456_v7 = vrot.slane %v2623_v29, 2  ;;  %v2880_v29 = vsel %vm392_vm1, %v453_v2, %v454_v49 }
  0x7c   : > { %631 = vrot.lane.b32.xlu0 %v2841_v18, %s2327_s22  ;;  %4086 = vst [vmem:[#allocation40_spill] sm:$0xff] %v2880_v29 }
  0x7d   : > { %v2875_v21 = vsel %vm392_vm1, %v454_v49, %v456_v7  ;;  %v464_v7 = vrot.slane %v2664_v57, 2  ;;  %v463_v49 = vrot.slane %v2670_v50, 2 }
  0x7e   : > { %4085 = vst [vmem:[#allocation39_spill] sm:$0xff] %v2875_v21 }
  0x7f   : > { %637 = vrot.lane.b32.xlu1 %v2849_v44, %s2327_s22  ;;  %v461_v44 = vrot.slane %v2645_v61, 2  ;;  %v2895_v61 = vsel %vm392_vm1, %v458_v51, %v459_v10  ;;  %v468_v51 = vrot.slane %v2692_v8, 2 }
  0x80   : > { %635 = vrot.lane.b32.xlu0 %v2854_v35, %s2327_s22  ;;  %4089 = vst [vmem:[#allocation43_spill] sm:$0xff] %v2895_v61 }
  0x81   : > { %v2888_v4 = vsel %vm392_vm1, %v459_v10, %v461_v44  ;;  %v2912_v10 = vsel %vm392_vm1, %v463_v49, %v464_v7 }
  0x82   : > { %4087 = vst [vmem:[#allocation41_spill] sm:$0xff] %v2888_v4  ;;  %4093 = vst [vmem:[#allocation47_spill] sm:$0xff] %v2912_v10 }
  0x83   : > { %641 = vrot.lane.b32.xlu1 %v2862_v20, %s2327_s22  ;;  %v466_v20 = vrot.slane %v2667_v45, 2  ;;  %v469_v45 = vrot.slane %v2686_v52, 2 }
  0x84   : > { %639 = vrot.lane.b32.xlu0 %v2867_v58, %s2327_s22 }
  0x85   : > { %v2905_v44 = vsel %vm392_vm1, %v464_v7, %v466_v20 }
  0x86   : > { %4091 = vst [vmem:[#allocation45_spill] sm:$0xff] %v2905_v44 }
  0x87   : > { %645 = vrot.lane.b32.xlu1 %v2875_v21, %s2327_s22  ;;  %v471_v21 = vrot.slane %v2689_v41, 2  ;;  %v2927_v41 = vsel %vm392_vm1, %v468_v51, %v469_v45 }
  0x88   : > { %643 = vrot.lane.b32.xlu0 %v2880_v29, %s2327_s22  ;;  %4097 = vst [vmem:[#allocation51_spill] sm:$0xff] %v2927_v41 }
  0x89   : > { %v2892_v58 = vpop.permute.xlu1 %503  ;;  %v2922_v20 = vsel %vm392_vm1, %v469_v45, %v471_v21 }
  0x8a   : > { %4088 = vst [vmem:[#allocation42_spill] sm:$0xff] %v2892_v58  ;;  %v2898_v2 = vpop.permute.xlu0 %499  ;;  %4095 = vst [vmem:[#allocation49_spill] sm:$0xff] %v2922_v20 }
  0x8b   : > { %4090 = vst [vmem:[#allocation44_spill] sm:$0xff] %v2898_v2  ;;  %649 = vrot.lane.b32.xlu1 %v2888_v4, %s2327_s22 }
  0x8c   : > { %647 = vrot.lane.b32.xlu0 %v2895_v61, %s2327_s22 }
  0x8d   : > { %v2909_v29 = vpop.permute.xlu1 %505 }
  0x8e   : > { %4092 = vst [vmem:[#allocation46_spill] sm:$0xff] %v2909_v29  ;;  %v2915_v35 = vpop.permute.xlu0 %501  ;;  %v1532_v29 = vld [vmem:[%s3955_s1 + $0x8] sm:$0xff] }
  0x8f   : > { %4094 = vst [vmem:[#allocation48_spill] sm:$0xff] %v2915_v35  ;;  %653 = vrot.lane.b32.xlu1 %v2905_v44, %s2327_s22 }
  0x90   : > { %651 = vrot.lane.b32.xlu0 %v2912_v10, %s2327_s22 }
  0x91   : > { %v2924_v4 = vpop.permute.xlu1 %509 }
  0x92   : > { %4096 = vst [vmem:[#allocation50_spill] sm:$0xff] %v2924_v4  ;;  %v2929_v7 = vpop.permute.xlu0 %507 }
  0x93   : > { %4098 = vst [vmem:[#allocation52_spill] sm:$0xff] %v2929_v7  ;;  %657 = vrot.lane.b32.xlu1 %v2922_v20, %s2327_s22  ;;  %v1531_v7 = vld [vmem:[%s3955_s1] sm:$0xff] }
  0x94   : > { %655 = vrot.lane.b32.xlu0 %v2927_v41, %s2327_s22  ;;  %v2269_v63 = vpack.c.bf16 %v1532_v29, %v1531_v7 }
  0x95   : > { %v2935_v49 = vpop.permute.xlu1 %513 }
  0x96   : > { %v2937_v44 = vpop.permute.xlu0 %511  ;;  %2270 = vmatprep.subr.bf16.mxu0 %v2269_v63  ;;  %2277 = vmatprep.subr.bf16.mxu1 %v2269_v63 }
  0x97   : > { %4099 = vst [vmem:[#allocation53_spill] sm:$0xff] %v2937_v44  ;;  %693 = vrot.lane.b32.xlu1 %v2379_v1, %s2328_s23  ;;  %2272 = vmatpush3.bf16.msra.mxu0 %v2269_v63 }
  0x98   : > { %691 = vrot.lane.b32.xlu0 %v2376_v0, %s2328_s23  ;;  %2280 = vmatpush3.bf16.msra.mxu1 %v2269_v63 }
  0x99   : > { %v2943_v21 = vpop.permute.xlu1 %517 }
  0x9a   : > { %v2945_v45 = vpop.permute.xlu0 %515 }
  0x9b   : > { %697 = vrot.lane.b32.xlu1 %v2399_v11, %s2328_s23 }
  0x9c   : > { %695 = vrot.lane.b32.xlu0 %v2409_v15, %s2328_s23 }
  0x9d   : > { %v2951_v51 = vpop.permute.xlu1 %521 }
  0x9e   : > { %v2953_v20 = vpop.permute.xlu0 %519 }
  0x9f   : > { %701 = vrot.lane.b32.xlu1 %v2423_v22, %s2328_s23 }
  0xa0   : > { %699 = vrot.lane.b32.xlu0 %v2429_v24, %s2328_s23 }
  0xa1   : > { %v2959_v0 = vpop.permute.xlu1 %525 }
  0xa2   : > { %v2961_v1 = vpop.permute.xlu0 %523 }
  0xa3   : > { %705 = vrot.lane.b32.xlu1 %v2444_v30, %s2328_s23 }
  0xa4   : > { %703 = vrot.lane.b32.xlu0 %v2450_v32, %s2328_s23 }
  0xa5   : > { %v2967_v41 = vpop.permute.xlu1 %529 }
  0xa6   : > { %v2969_v10 = vpop.permute.xlu0 %527 }
  0xa7   : > { %709 = vrot.lane.b32.xlu1 %v2466_v38, %s2328_s23 }
  0xa8   : > { %707 = vrot.lane.b32.xlu0 %v2472_v40, %s2328_s23 }
  0xa9   : > { %v2975_v61 = vpop.permute.xlu1 %533 }
  0xaa   : > { %v2977_v44 = vpop.permute.xlu0 %531 }
  0xab   : > { %713 = vrot.lane.b32.xlu1 %v2488_v46, %s2328_s23 }
  0xac   : > { %711 = vrot.lane.b32.xlu0 %v2494_v48, %s2328_s23 }
  0xad   : > { %v2983_v4 = vpop.permute.xlu1 %537 }
  0xae   : > { %v2985_v18 = vpop.permute.xlu0 %535 }
  0xaf   : > { %789 = vrot.lane.b32.xlu1 %v2416_v17, %s2329_s24  ;;  %v1533_v17 = vld [vmem:[%s3955_s1 + $0x10] sm:$0xff] }
  0xb0   : > { %787 = vrot.lane.b32.xlu0 %v2402_v12, %s2329_s24  ;;  %v1534_v12 = vld [vmem:[%s3955_s1 + $0x18] sm:$0xff] }
  0xb1   : > { %v2997_v58 = vpop.permute.xlu1 %541  ;;  %v2273_v29 = vpack.c.bf16 %v1534_v12, %v1533_v17 }
  0xb2   : > { %v2999_v35 = vpop.permute.xlu0 %539 }
  0xb3   : > { %885 = vrot.lane.b32.xlu1 %v2732_v9, %s2330_s29  ;;  %2274 = vmatprep.subr.bf16.mxu0 %v2273_v29 }
  0xb4   : > { %883 = vrot.lane.b32.xlu0 %v2737_v33, %s2330_s29  ;;  %2278 = vmatprep.subr.bf16.mxu1 %v2273_v29  ;;  %v1535_v33 = vld [vmem:[%s3955_s1 + $0x20] sm:$0xf] }
  0xb5   : > { %v3011_v7 = vpop.permute.xlu1 %545  ;;  %2276 = vmatpush3.bf16.msra.mxu0 %v2273_v29  ;;  %2281 = vmatpush3.bf16.msra.mxu1 %v2273_v29 }
  0xb6   : > { %v3013_v2 = vpop.permute.xlu0 %543  ;;  %2219 = vmatprep.subr.msk.mxu0 %vm1640_vm2, %v1535_v33  ;;  %2279 = vmatprep.subr.msk.mxu1 %vm1640_vm2, %v1535_v33 }
  0xb7   : > { %981 = vrot.lane.b32.xlu1 %v2399_v11, %s2331_s8 }
  0xb8   : > { %979 = vrot.lane.b32.xlu0 %v2409_v15, %s2331_s8 }
  0xb9   : > { %v3022_v9 = vpop.permute.xlu1 %549  ;;  %2220 = vmatpush3.msk.msra.mxu0 %vm1640_vm2, %v1535_v33  ;;  %2282 = vmatpush3.msk.msra.mxu1 %vm1640_vm2, %v1535_v33 }
  0xba   : > { %v3024_v63 = vpop.permute.xlu0 %547 }
  0xbb   : > { %791 = vrot.lane.b32.xlu1 %v2440_v28, %s2329_s24 }
  0xbc   : > { %1075 = vrot.lane.b32.xlu0 %v2440_v28, %s2332_s11 }
  0xbd   : > { %v3030_v11 = vpop.permute.xlu1 %553 }
  0xbe   : > { %v3032_v15 = vpop.permute.xlu0 %551 }
  0xbf   : > { %1171 = vrot.lane.b32.xlu1 %v2750_v14, %s2333_s12 }
  0xc0   : > { %1077 = vrot.lane.b32.xlu0 %v2435_v25, %s2332_s11 }
  0xc1   : > { %v3038_v17 = vpop.permute.xlu1 %557 }
  0xc2   : > { %v3040_v12 = vpop.permute.xlu0 %555 }
  0xc3   : > { %887 = vrot.lane.b32.xlu1 %v2750_v14, %s2330_s29 }
  0xc4   : > { %793 = vrot.lane.b32.xlu0 %v2435_v25, %s2329_s24 }
  0xc5   : > { %v3046_v28 = vpop.permute.xlu1 %561 }
  0xc6   : > { %v3048_v29 = vpop.permute.xlu0 %559 }
  0xc7   : > { %889 = vrot.lane.b32.xlu1 %v2745_v43, %s2330_s29 }
  0xc8   : > { %1173 = vrot.lane.b32.xlu0 %v2745_v43, %s2333_s12 }
  0xc9   : > { %v3054_v33 = vpop.permute.xlu1 %597 }
  0xca   : > { %4100 = vst [vmem:[#allocation54_spill] sm:$0xff] %v3054_v33  ;;  %v3056_v55 = vpop.permute.xlu0 %595 }
  0xcb   : > { %4101 = vst [vmem:[#allocation55_spill] sm:$0xff] %v3056_v55  ;;  %985 = vrot.lane.b32.xlu1 %v2423_v22, %s2331_s8 }
  0xcc   : > { %983 = vrot.lane.b32.xlu0 %v2429_v24, %s2331_s8  ;;  %v4106_v24 = vld [vmem:[#allocation3_spill] sm:$0xff] }
  0xcd   : > { %v3062_v25 = vpop.permute.xlu1 %601 }
  0xce   : > { %4102 = vst [vmem:[#allocation56_spill] sm:$0xff] %v3062_v25  ;;  %v3064_v14 = vpop.permute.xlu0 %599  ;;  %v1275_v25 = vsel %vm1267_vm3, %v2423_v22, %v2935_v49  ;;  %v1276_v22 = vsel %vm1267_vm3, %v2450_v32, %v2945_v45  ;;  %v1278_v45 = vsel %vm1267_vm3, %v2472_v40, %v2953_v20  ;;  %v1280_v20 = vsel %vm1267_vm3, %v2494_v48, %v2961_v1 }
  0xcf   : > { %4103 = vst [vmem:[#allocation57_spill] sm:$0xff] %v3064_v14  ;;  %795 = vrot.lane.b32.xlu1 %v2462_v36, %s2329_s24  ;;  %v1282_v1 = vsel %vm1267_vm3, %v2516_v56, %v2969_v10  ;;  %v1284_v10 = vsel %vm1267_vm3, %v2538_v3, %v2977_v44  ;;  %v1286_v44 = vsel %vm1267_vm3, %v2560_v19, %v2985_v18 }
  0xd0   : > { %1079 = vrot.lane.b32.xlu0 %v2462_v36, %s2332_s11  ;;  %v1288_v18 = vsel %vm1267_vm3, %v2582_v37, %v2999_v35  ;;  %v1290_v37 = vsel %vm1267_vm3, %v2604_v59, %v3013_v2  ;;  %v1292_v59 = vsel %vm1267_vm3, %v2626_v42, %v3024_v63  ;;  %v1294_v42 = vsel %vm1267_vm3, %v2648_v13, %v3032_v15 }
  0xd1   : > { %v3070_v43 = vpop.permute.xlu1 %605  ;;  %v1296_v13 = vsel %vm1267_vm3, %v2670_v50, %v3040_v12  ;;  %v1298_v50 = vsel %vm1267_vm3, %v2692_v8, %v3048_v29 }
  0xd2   : > { %4104 = vst [vmem:[#allocation58_spill] sm:$0xff] %v3070_v43  ;;  %v3072_v33 = vpop.permute.xlu0 %603  ;;  %v1277_v43 = vsel %vm1267_vm3, %v2444_v30, %v2943_v21 }
  0xd3   : > { %4105 = vst [vmem:[#allocation59_spill] sm:$0xff] %v3072_v33  ;;  %1175 = vrot.lane.b32.xlu1 %v2763_v23, %s2333_s12 }
  0xd4   : > { %1081 = vrot.lane.b32.xlu0 %v4106_v24, %s2332_s11 }
  0xd5   : > { %v610_v14 = vpop.permute.xlu1 %609 }
  0xd6   : > { %v3082_v55 = vsel %vm1300_vm4, %v1275_v25, %v610_v14  ;;  %v3084_v36 = vpop.permute.xlu0 %607 }
  0xd7   : > { %891 = vrot.lane.b32.xlu1 %v2763_v23, %s2330_s29  ;;  %v1279_v23 = vsel %vm1267_vm3, %v2466_v38, %v2951_v51 }
  0xd8   : > { %797 = vrot.lane.b32.xlu0 %v4106_v24, %s2329_s24 }
  0xd9   : > { %v614_v33 = vpop.permute.xlu1 %613 }
  0xda   : > { %v3097_v49 = vsel %vm1300_vm4, %v1277_v43, %v614_v33  ;;  %v612_v25 = vpop.permute.xlu0 %611 }
  0xdb   : > { %v3100_v14 = vsel %vm1300_vm4, %v1276_v22, %v612_v25  ;;  %893 = vrot.lane.b32.xlu1 %v2758_v5, %s2330_s29 }
  0xdc   : > { %1177 = vrot.lane.b32.xlu0 %v2758_v5, %s2333_s12  ;;  %v1281_v5 = vsel %vm1267_vm3, %v2488_v46, %v2959_v0 }
  0xdd   : > { %v618_v21 = vpop.permute.xlu1 %617 }
  0xde   : > { %v3113_v33 = vsel %vm1300_vm4, %v1279_v23, %v618_v21  ;;  %v616_v43 = vpop.permute.xlu0 %615 }
  0xdf   : > { %v3116_v24 = vsel %vm1300_vm4, %v1278_v45, %v616_v43  ;;  %989 = vrot.lane.b32.xlu1 %v2444_v30, %s2331_s8  ;;  %v4107_v30 = vld [vmem:[#allocation5_spill] sm:$0xff] }
  0xe0   : > { %987 = vrot.lane.b32.xlu0 %v2450_v32, %s2331_s8  ;;  %v1283_v32 = vsel %vm1267_vm3, %v2510_v54, %v2967_v41  ;;  %v1285_v41 = vsel %vm1267_vm3, %v2532_v62, %v2975_v61  ;;  %v1287_v61 = vsel %vm1267_vm3, %v2554_v16, %v2983_v4 }
  0xe1   : > { %v622_v51 = vpop.permute.xlu1 %621 }
  0xe2   : > { %v3129_v22 = vsel %vm1300_vm4, %v1281_v5, %v622_v51  ;;  %v620_v25 = vpop.permute.xlu0 %619  ;;  %v4108_v5 = vld [vmem:[#allocation4_spill] sm:$0xff] }
  0xe3   : > { %v3132_v23 = vsel %vm1300_vm4, %v1280_v20, %v620_v25  ;;  %799 = vrot.lane.b32.xlu1 %v4107_v30, %s2329_s24 }
  0xe4   : > { %1083 = vrot.lane.b32.xlu0 %v4107_v30, %s2332_s11 }
  0xe5   : > { %v626_v0 = vpop.permute.xlu1 %625 }
  0xe6   : > { %v3145_v21 = vsel %vm1300_vm4, %v1283_v32, %v626_v0  ;;  %v624_v45 = vpop.permute.xlu0 %623 }
  0xe7   : > { %v3148_v43 = vsel %vm1300_vm4, %v1282_v1, %v624_v45  ;;  %1179 = vrot.lane.b32.xlu1 %v2776_v31, %s2333_s12 }
  0xe8   : > { %1085 = vrot.lane.b32.xlu0 %v4108_v5, %s2332_s11 }
  0xe9   : > { %v630_v51 = vpop.permute.xlu1 %629 }
  0xea   : > { %v3161_v20 = vsel %vm1300_vm4, %v1285_v41, %v630_v51  ;;  %v628_v25 = vpop.permute.xlu0 %627 }
  0xeb   : > { %v3164_v30 = vsel %vm1300_vm4, %v1284_v10, %v628_v25  ;;  %895 = vrot.lane.b32.xlu1 %v2776_v31, %s2330_s29  ;;  %v1289_v31 = vsel %vm1267_vm3, %v2576_v34, %v2997_v58  ;;  %v1291_v34 = vsel %vm1267_vm3, %v2598_v53, %v3011_v7 }
  0xec   : > { %801 = vrot.lane.b32.xlu0 %v4108_v5, %s2329_s24 }
  0xed   : > { %v634_v32 = vpop.permute.xlu1 %633 }
  0xee   : > { %v3177_v0 = vsel %vm1300_vm4, %v1287_v61, %v634_v32  ;;  %v632_v1 = vpop.permute.xlu0 %631  ;;  %v4110_v61 = vld [vmem:[#allocation6_spill] sm:$0xff] }
  0xef   : > { %v3180_v45 = vsel %vm1300_vm4, %v1286_v44, %v632_v1  ;;  %897 = vrot.lane.b32.xlu1 %v2771_v60, %s2330_s29 }
  0xf0   : > { %1181 = vrot.lane.b32.xlu0 %v2771_v60, %s2333_s12 }
  0xf1   : > { %v638_v4 = vpop.permute.xlu1 %637 }
  0xf2   : > { %v3193_v5 = vsel %vm1300_vm4, %v1289_v31, %v638_v4  ;;  %v636_v41 = vpop.permute.xlu0 %635 }
  0xf3   : > { %v3196_v51 = vsel %vm1300_vm4, %v1288_v18, %v636_v41  ;;  %993 = vrot.lane.b32.xlu1 %v2466_v38, %s2331_s8  ;;  %v4109_v38 = vld [vmem:[#allocation7_spill] sm:$0xff] }
  0xf4   : > { %991 = vrot.lane.b32.xlu0 %v2472_v40, %s2331_s8  ;;  %v1293_v40 = vsel %vm1267_vm3, %v2620_v26, %v3022_v9  ;;  %v1295_v26 = vsel %vm1267_vm3, %v2642_v27, %v3030_v11  ;;  %v1297_v27 = vsel %vm1267_vm3, %v2664_v57, %v3038_v17  ;;  %v1299_v57 = vsel %vm1267_vm3, %v2686_v52, %v3046_v28  ;;  %v4111_v28 = vld [vmem:[#allocation9_spill] sm:$0xff] }
  0xf5   : > { %v642_v60 = vpop.permute.xlu1 %641 }
  0xf6   : > { %v3209_v35 = vsel %vm1300_vm4, %v1291_v34, %v642_v60  ;;  %v640_v58 = vpop.permute.xlu0 %639  ;;  %v4113_v60 = vld [vmem:[#allocation28_spill] sm:$0xff] }
  0xf7   : > { %v3212_v10 = vsel %vm1300_vm4, %v1290_v37, %v640_v58  ;;  %803 = vrot.lane.b32.xlu1 %v4109_v38, %s2329_s24 }
  0xf8   : > { %1087 = vrot.lane.b32.xlu0 %v4109_v38, %s2332_s11 }
  0xf9   : > { %v646_v53 = vpop.permute.xlu1 %645 }
  0xfa   : > { %v3225_v2 = vsel %vm1300_vm4, %v1293_v40, %v646_v53  ;;  %v644_v7 = vpop.permute.xlu0 %643  ;;  %v4114_v40 = vld [vmem:[#allocation11_spill] sm:$0xff] }
  0xfb   : > { %v3228_v25 = vsel %vm1300_vm4, %v1292_v59, %v644_v7  ;;  %1183 = vrot.lane.b32.xlu1 %v2789_v39, %s2333_s12 }
  0xfc   : > { %1089 = vrot.lane.b32.xlu0 %v4110_v61, %s2332_s11 }
  0xfd   : > { %v650_v9 = vpop.permute.xlu1 %649 }
  0xfe   : > { %v3241_v63 = vsel %vm1300_vm4, %v1295_v26, %v650_v9  ;;  %v648_v32 = vpop.permute.xlu0 %647  ;;  %v4116_v26 = vld [vmem:[#allocation10_spill] sm:$0xff] }
  0xff   : > { %v3244_v44 = vsel %vm1300_vm4, %v1294_v42, %v648_v32  ;;  %899 = vrot.lane.b32.xlu1 %v2789_v39, %s2330_s29  ;;  %v4117_v32 = vld [vmem:[#allocation44_spill] sm:$0xff] }
 0x100   : > { %805 = vrot.lane.b32.xlu0 %v4110_v61, %s2329_s24  ;;  %v4115_v61 = vld [vmem:[#allocation30_spill] sm:$0xff] }
 0x101   : > { %v654_v11 = vpop.permute.xlu1 %653 }
 0x102   : > { %v3257_v15 = vsel %vm1300_vm4, %v1297_v27, %v654_v11  ;;  %v652_v1 = vpop.permute.xlu0 %651  ;;  %v4118_v27 = vld [vmem:[#allocation2_spill] sm:$0xff] }
 0x103   : > { %v3260_v31 = vsel %vm1300_vm4, %v1296_v13, %v652_v1  ;;  %901 = vrot.lane.b32.xlu1 %v2784_v6, %s2330_s29  ;;  %v1268_v11 = vsel %vm1267_vm3, %v4118_v27, %v4117_v32 }
 0x104   : > { %1185 = vrot.lane.b32.xlu0 %v2784_v6, %s2333_s12 }
 0x105   : > { %v658_v39 = vpop.permute.xlu1 %657 }
 0x106   : > { %v3273_v17 = vsel %vm1300_vm4, %v1299_v57, %v658_v39  ;;  %v656_v12 = vpop.permute.xlu0 %655 }
 0x107   : > { %v3276_v4 = vsel %vm1300_vm4, %v1298_v50, %v656_v12  ;;  %997 = vrot.lane.b32.xlu1 %v2488_v46, %s2331_s8  ;;  %v4112_v46 = vld [vmem:[#allocation8_spill] sm:$0xff] }
 0x108   : > { %995 = vrot.lane.b32.xlu0 %v2494_v48, %s2331_s8 }
 0x109   : > { %v3282_v6 = vpop.permute.xlu1 %693 }
 0x10a   : > { %v692_v52 = vpop.permute.xlu0 %691 }
 0x10b   : > { %807 = vrot.lane.b32.xlu1 %v4111_v28, %s2329_s24 }
 0x10c   : > { %1091 = vrot.lane.b32.xlu0 %v4111_v28, %s2332_s11  ;;  %v4120_v28 = vld [vmem:[#allocation29_spill] sm:$0xff] }
 0x10d   : > { %v3288_v8 = vpop.permute.xlu1 %697 }
 0x10e   : > { %v3290_v29 = vpop.permute.xlu0 %695 }
 0x10f   : > { %1187 = vrot.lane.b32.xlu1 %v2802_v47, %s2333_s12 }
 0x110   : > { %1093 = vrot.lane.b32.xlu0 %v4112_v46, %s2332_s11 }
 0x111   : > { %v3296_v48 = vpop.permute.xlu1 %701 }
 0x112   : > { %v3298_v18 = vpop.permute.xlu0 %699 }
 0x113   : > { %903 = vrot.lane.b32.xlu1 %v2802_v47, %s2330_s29 }
 0x114   : > { %809 = vrot.lane.b32.xlu0 %v4112_v46, %s2329_s24 }
 0x115   : > { %v3304_v41 = vpop.permute.xlu1 %705 }
 0x116   : > { %v3306_v34 = vpop.permute.xlu0 %703 }
 0x117   : > { %905 = vrot.lane.b32.xlu1 %v4113_v60, %s2330_s29 }
 0x118   : > { %1189 = vrot.lane.b32.xlu0 %v4113_v60, %s2333_s12 }
 0x119   : > { %v3312_v37 = vpop.permute.xlu1 %709 }
 0x11a   : > { %v3314_v58 = vpop.permute.xlu0 %707 }
 0x11b   : > { %715 = vrot.lane.b32.xlu1 %v2516_v56, %s2328_s23 }
 0x11c   : > { %999 = vrot.lane.b32.xlu0 %v2516_v56, %s2331_s8 }
 0x11d   : > { %v3320_v47 = vpop.permute.xlu1 %713 }
 0x11e   : > { %v3322_v38 = vpop.permute.xlu0 %711 }
 0x11f   : > { %1095 = vrot.lane.b32.xlu1 %v4114_v40, %s2332_s11 }
 0x120   : > { %1001 = vrot.lane.b32.xlu0 %v2510_v54, %s2331_s8 }
 0x121   : > { %v790_v53 = vpop.permute.xlu1 %789 }
 0x122   : > { %v788_v59 = vpop.permute.xlu0 %787 }
 0x123   : > { %811 = vrot.lane.b32.xlu1 %v4114_v40, %s2329_s24 }
 0x124   : > { %717 = vrot.lane.b32.xlu0 %v2510_v54, %s2328_s23  ;;  %v4119_v54 = vld [vmem:[#allocation55_spill] sm:$0xff] }
 0x125   : > { %v886_v7 = vpop.permute.xlu1 %885  ;;  %v1301_v13 = vsel %vm1300_vm4, %v1268_v11, %v4119_v54 }
 0x126   : > { %v884_v56 = vpop.permute.xlu0 %883  ;;  %v1334_v1 = vsel %vm1333_vm5, %v1301_v13, %v692_v52 }
 0x127   : > { %1191 = vrot.lane.b32.xlu1 %v4115_v61, %s2333_s12  ;;  %v1367_v39 = vsel %vm1366_vm6, %v1334_v1, %v788_v59  ;;  %v4123_v1 = vld [vmem:[#allocation13_spill] sm:$0xff] }
 0x128   : > { %1097 = vrot.lane.b32.xlu0 %v4116_v26, %s2332_s11  ;;  %v1400_v12 = vsel %vm1399_vm7, %v1367_v39, %v884_v56  ;;  %v2300_v56 = vld [vmem:[%s2373_s20 + $0x8] sm:$0xff] }
 0x129   : > { %v982_v9 = vpop.permute.xlu1 %981 }
 0x12a   : > { %v980_v42 = vpop.permute.xlu0 %979 }
 0x12b   : > { %907 = vrot.lane.b32.xlu1 %v4115_v61, %s2330_s29  ;;  %v1433_v46 = vsel %vm1432_vm8, %v1400_v12, %v980_v42  ;;  %v4121_v61 = vld [vmem:[#allocation48_spill] sm:$0xff]  ;;  %v4122_v42 = vld [vmem:[#allocation54_spill] sm:$0xff] }
 0x12c   : > { %813 = vrot.lane.b32.xlu0 %v4116_v26, %s2329_s24  ;;  %v1269_v26 = vsel %vm1267_vm3, %v2300_v56, %v4121_v61  ;;  %v4127_v56 = vld [vmem:[#allocation12_spill] sm:$0xff] }
 0x12d   : > { %v792_v57 = vpop.permute.xlu1 %791  ;;  %v1302_v32 = vsel %vm1300_vm4, %v1269_v26, %v4122_v42 }
 0x12e   : > { %v1076_v50 = vpop.permute.xlu0 %1075  ;;  %v1335_v11 = vsel %vm1333_vm5, %v1302_v32, %v3282_v6 }
 0x12f   : > { %909 = vrot.lane.b32.xlu1 %v4120_v28, %s2330_s29  ;;  %v1466_v52 = vsel %vm1465_vm9, %v1433_v46, %v1076_v50  ;;  %v1368_v13 = vsel %vm1366_vm6, %v1335_v11, %v790_v53  ;;  %v2301_v46 = vld [vmem:[%s2373_s20 + $0x18] sm:$0xff] }
 0x130   : > { %1193 = vrot.lane.b32.xlu0 %v4120_v28, %s2333_s12  ;;  %v1401_v39 = vsel %vm1399_vm7, %v1368_v13, %v886_v7 }
 0x131   : > { %v1172_v60 = vpop.permute.xlu1 %1171 }
 0x132   : > { %v1078_v40 = vpop.permute.xlu0 %1077  ;;  %v1499_v59 = vsel %vm1498_vm10, %v1466_v52, %v1172_v60  ;;  %v4124_v52 = vld [vmem:[#allocation42_spill] sm:$0xff]  ;;  %v4125_v60 = vld [vmem:[#allocation32_spill] sm:$0xff] }
 0x133   : > { %719 = vrot.lane.b32.xlu1 %v2538_v3, %s2328_s23  ;;  %2221 = vmatprep.mubr.msk.f32.mxu0 %vm1543_vm11, %v1499_v59 }
 0x134   : > { %1003 = vrot.lane.b32.xlu0 %v2538_v3, %s2331_s8  ;;  %v1434_v3 = vsel %vm1432_vm8, %v1401_v39, %v982_v9  ;;  %v1270_v9 = vsel %vm1267_vm3, %v2301_v46, %v4124_v52 }
 0x135   : > { %v888_v27 = vpop.permute.xlu1 %887  ;;  %v1467_v12 = vsel %vm1465_vm9, %v1434_v3, %v1078_v40  ;;  %v4126_v40 = vld [vmem:[#allocation57_spill] sm:$0xff]  ;;  %v4128_v3 = vld [vmem:[#allocation31_spill] sm:$0xff] }
 0x136   : > { %v794_v54 = vpop.permute.xlu0 %793  ;;  %v1303_v59 = vsel %vm1300_vm4, %v1270_v9, %v4126_v40 }
 0x137   : > { %1099 = vrot.lane.b32.xlu1 %v4123_v1, %s2332_s11 }
 0x138   : > { %1005 = vrot.lane.b32.xlu0 %v2532_v62, %s2331_s8 }
 0x139   : > { %v890_v50 = vpop.permute.xlu1 %889 }
 0x13a   : > { %v1174_v28 = vpop.permute.xlu0 %1173 }
 0x13b   : > { %v1500_v6 = vsel %vm1498_vm10, %v1467_v12, %v1174_v28  ;;  %815 = vrot.lane.b32.xlu1 %v4123_v1, %s2329_s24  ;;  %v4130_v28 = vld [vmem:[#allocation56_spill] sm:$0xff] }
 0x13c   : > { %721 = vrot.lane.b32.xlu0 %v2532_v62, %s2328_s23  ;;  %2222 = vmatmul.mubr.msk.f32.vlgmr.msra.gmra.mrb[0].mxu0 %vm1543_vm11, %v1500_v6  ;;  %v1336_v62 = vsel %vm1333_vm5, %v1303_v59, %v3290_v29 }
 0x13d   : > { %v986_v53 = vpop.permute.xlu1 %985  ;;  %v1369_v26 = vsel %vm1366_vm6, %v1336_v62, %v792_v57  ;;  %v2302_v57 = vld [vmem:[%s2373_s20 + $0x20] sm:$0xff] }
 0x13e   : > { %v984_v7 = vpop.permute.xlu0 %983  ;;  %v1402_v32 = vsel %vm1399_vm7, %v1369_v26, %v888_v27  ;;  %v4129_v27 = vld [vmem:[#allocation46_spill] sm:$0xff]  ;;  %v4131_v26 = vld [vmem:[#allocation15_spill] sm:$0xff] }
 0x13f   : > { %1195 = vrot.lane.b32.xlu1 %v4125_v60, %s2333_s12  ;;  %v1435_v11 = vsel %vm1432_vm8, %v1402_v32, %v984_v7  ;;  %v1271_v12 = vsel %vm1267_vm3, %v2302_v57, %v4129_v27  ;;  %v4133_v32 = vld [vmem:[#allocation59_spill] sm:$0xff]  ;;  %v4134_v57 = vld [vmem:[#allocation34_spill] sm:$0xff] }
 0x140   : > { %1101 = vrot.lane.b32.xlu0 %v4127_v56, %s2332_s11  ;;  %v1304_v6 = vsel %vm1300_vm4, %v1271_v12, %v4130_v28  ;;  %v4135_v12 = vld [vmem:[#allocation14_spill] sm:$0xff] }
 0x141   : > { %v796_v61 = vpop.permute.xlu1 %795  ;;  %v1337_v46 = vsel %vm1333_vm5, %v1304_v6, %v3288_v8 }
 0x142   : > { %v1080_v42 = vpop.permute.xlu0 %1079  ;;  %v1370_v9 = vsel %vm1366_vm6, %v1337_v46, %v794_v54 }
 0x143   : > { %911 = vrot.lane.b32.xlu1 %v4125_v60, %s2330_s29  ;;  %v1468_v13 = vsel %vm1465_vm9, %v1435_v11, %v1080_v42  ;;  %v1403_v60 = vsel %vm1399_vm7, %v1370_v9, %v890_v50  ;;  %v2303_v42 = vld [vmem:[%s2373_s20 + $0x30] sm:$0xff]  ;;  %v4137_v9 = vld [vmem:[#allocation58_spill] sm:$0xff] }
 0x144   : > { %817 = vrot.lane.b32.xlu0 %v4127_v56, %s2329_s24  ;;  %v1436_v40 = vsel %vm1432_vm8, %v1403_v60, %v986_v53 }
 0x145   : > { %v1176_v1 = vpop.permute.xlu1 %1175 }
 0x146   : > { %v1501_v39 = vsel %vm1498_vm10, %v1468_v13, %v1176_v1  ;;  %v1082_v29 = vpop.permute.xlu0 %1081 }
 0x147   : > { %913 = vrot.lane.b32.xlu1 %v4128_v3, %s2330_s29  ;;  %2224 = vmatprep.mubr.msk.f32.mxu0 %vm1543_vm11, %v1501_v39  ;;  %v1469_v56 = vsel %vm1465_vm9, %v1436_v40, %v1082_v29 }
 0x148   : > { %1197 = vrot.lane.b32.xlu0 %v4128_v3, %s2333_s12 }
 0x149   : > { %v892_v7 = vpop.permute.xlu1 %891 }
 0x14a   : > { %v798_v52 = vpop.permute.xlu0 %797 }
 0x14b   : > { %723 = vrot.lane.b32.xlu1 %v2560_v19, %s2328_s23 }
 0x14c   : > { %1007 = vrot.lane.b32.xlu0 %v2560_v19, %s2331_s8  ;;  %v4132_v19 = vld [vmem:[#allocation52_spill] sm:$0xff] }
 0x14d   : > { %v894_v59 = vpop.permute.xlu1 %893  ;;  %v1272_v53 = vsel %vm1267_vm3, %v2303_v42, %v4132_v19 }
 0x14e   : > { %v1178_v62 = vpop.permute.xlu0 %1177  ;;  %v1305_v11 = vsel %vm1300_vm4, %v1272_v53, %v4133_v32 }
 0x14f   : > { %v1502_v8 = vsel %vm1498_vm10, %v1469_v56, %v1178_v62  ;;  %1103 = vrot.lane.b32.xlu1 %v4131_v26, %s2332_s11  ;;  %v1338_v13 = vsel %vm1333_vm5, %v1305_v11, %v3298_v18  ;;  %v2305_v11 = vld [vmem:[%s2373_s20 + $0xf0] sm:$0xff] }
 0x150   : > { %1009 = vrot.lane.b32.xlu0 %v2554_v16, %s2331_s8  ;;  %2225 = vmatmul.mubr.msk.f32.gmra.mrb[2].mxu0 %vm1543_vm11, %v1502_v8  ;;  %v1371_v39 = vsel %vm1366_vm6, %v1338_v13, %v796_v61  ;;  %v2304_v61 = vld [vmem:[%s2373_s20 + $0x38] sm:$0xff]  ;;  %v2306_v13 = vld [vmem:[%s2373_s20 + $0x48] sm:$0xff] }
 0x151   : > { %v990_v54 = vpop.permute.xlu1 %989  ;;  %v1404_v3 = vsel %vm1399_vm7, %v1371_v39, %v892_v7  ;;  %v4136_v7 = vld [vmem:[#allocation50_spill] sm:$0xff]  ;;  %v4139_v39 = vld [vmem:[#allocation53_spill] sm:$0xff] }
 0x152   : > { %v988_v50 = vpop.permute.xlu0 %987  ;;  %v1273_v46 = vsel %vm1267_vm3, %v2304_v61, %v4136_v7 }
 0x153   : > { %819 = vrot.lane.b32.xlu1 %v4131_v26, %s2329_s24  ;;  %v1437_v27 = vsel %vm1432_vm8, %v1404_v3, %v988_v50  ;;  %v1306_v60 = vsel %vm1300_vm4, %v1273_v46, %v4137_v9  ;;  %v4138_v26 = vld [vmem:[#allocation33_spill] sm:$0xff] }
 0x154   : > { %725 = vrot.lane.b32.xlu0 %v2554_v16, %s2328_s23  ;;  %v1339_v56 = vsel %vm1333_vm5, %v1306_v60, %v3296_v48  ;;  %v1341_v60 = vsel %vm1333_vm5, %v3082_v55, %v3304_v41  ;;  %v4143_v41 = vld [vmem:[#allocation35_spill] sm:$0xff] }
 0x155   : > { %v800_v1 = vpop.permute.xlu1 %799  ;;  %v1372_v8 = vsel %vm1366_vm6, %v1339_v56, %v798_v52 }
 0x156   : > { %v1084_v29 = vpop.permute.xlu0 %1083  ;;  %v1405_v50 = vsel %vm1399_vm7, %v1372_v8, %v894_v59 }
 0x157   : > { %1199 = vrot.lane.b32.xlu1 %v4134_v57, %s2333_s12  ;;  %v1470_v28 = vsel %vm1465_vm9, %v1437_v27, %v1084_v29  ;;  %v1438_v42 = vsel %vm1432_vm8, %v1405_v50, %v990_v54  ;;  %v1274_v29 = vsel %vm1267_vm3, %v2306_v13, %v4139_v39  ;;  %v4140_v54 = vld [vmem:[#allocation17_spill] sm:$0xff]  ;;  %v4144_v39 = vld [vmem:[#allocation19_spill] sm:$0xff] }
 0x158   : > { %1105 = vrot.lane.b32.xlu0 %v4135_v12, %s2332_s11  ;;  %v1307_v3 = vsel %vm1300_vm4, %v1274_v29, %v3084_v36 }
 0x159   : > { %v1180_v16 = vpop.permute.xlu1 %1179  ;;  %v1340_v27 = vsel %vm1333_vm5, %v1307_v3, %v3306_v34  ;;  %v4141_v34 = vld [vmem:[#allocation36_spill] sm:$0xff] }
 0x15a   : > { %v1503_v6 = vsel %vm1498_vm10, %v1470_v28, %v1180_v16  ;;  %v1086_v18 = vpop.permute.xlu0 %1085  ;;  %v1373_v28 = vsel %vm1366_vm6, %v1340_v27, %v800_v1  ;;  %v4142_v1 = vld [vmem:[#allocation16_spill] sm:$0xff] }
 0x15b   : > { %915 = vrot.lane.b32.xlu1 %v4134_v57, %s2330_s29  ;;  %2227 = vmatprep.mubr.msk.f32.mxu0 %vm1543_vm11, %v1503_v6  ;;  %v1471_v53 = vsel %vm1465_vm9, %v1438_v42, %v1086_v18  ;;  %v2307_v57 = vld [vmem:[%s2373_s20 + $0xf8] sm:$0xff] }
 0x15c   : > { %821 = vrot.lane.b32.xlu0 %v4135_v12, %s2329_s24 }
 0x15d   : > { %v896_v40 = vpop.permute.xlu1 %895 }
 0x15e   : > { %v802_v62 = vpop.permute.xlu0 %801  ;;  %v1406_v6 = vsel %vm1399_vm7, %v1373_v28, %v896_v40 }
 0x15f   : > { %917 = vrot.lane.b32.xlu1 %v4138_v26, %s2330_s29  ;;  %v1374_v56 = vsel %vm1366_vm6, %v1341_v60, %v802_v62 }
 0x160   : > { %1201 = vrot.lane.b32.xlu0 %v4138_v26, %s2333_s12 }
 0x161   : > { %v898_v19 = vpop.permute.xlu1 %897 }
 0x162   : > { %v1182_v32 = vpop.permute.xlu0 %1181  ;;  %v1407_v8 = vsel %vm1399_vm7, %v1374_v56, %v898_v19  ;;  %v2310_v56 = vld [vmem:[%s2373_s20 + $0x120] sm:$0xff] }
 0x163   : > { %v1504_v48 = vsel %vm1498_vm10, %v1471_v53, %v1182_v32  ;;  %727 = vrot.lane.b32.xlu1 %v2305_v11, %s2328_s23  ;;  %v2308_v32 = vld [vmem:[%s2373_s20 + $0x108] sm:$0xff] }
 0x164   : > { %1011 = vrot.lane.b32.xlu0 %v2305_v11, %s2331_s8  ;;  %2228 = vmatmul.mubr.msk.f32.gmra.mrb[4].mxu0 %vm1543_vm11, %v1504_v48  ;;  %v1342_v48 = vsel %vm1333_vm5, %v3100_v14, %v3314_v58 }
 0x165   : > { %v994_v52 = vpop.permute.xlu1 %993 }
 0x166   : > { %v992_v59 = vpop.permute.xlu0 %991  ;;  %v1440_v26 = vsel %vm1432_vm8, %v1407_v8, %v994_v52  ;;  %v1344_v8 = vsel %vm1333_vm5, %v3116_v24, %v3322_v38 }
 0x167   : > { %1107 = vrot.lane.b32.xlu1 %v4140_v54, %s2332_s11  ;;  %v1439_v18 = vsel %vm1432_vm8, %v1406_v6, %v992_v59  ;;  %v4145_v6 = vld [vmem:[#allocation38_spill] sm:$0xff] }
 0x168   : > { %1013 = vrot.lane.b32.xlu0 %v2307_v57, %s2331_s8 }
 0x169   : > { %v804_v12 = vpop.permute.xlu1 %803 }
 0x16a   : > { %v1088_v16 = vpop.permute.xlu0 %1087  ;;  %v1375_v52 = vsel %vm1366_vm6, %v1342_v48, %v804_v12  ;;  %v1343_v12 = vsel %vm1333_vm5, %v3097_v49, %v3312_v37 }
 0x16b   : > { %823 = vrot.lane.b32.xlu1 %v4140_v54, %s2329_s24  ;;  %v1472_v36 = vsel %vm1465_vm9, %v1439_v18, %v1088_v16  ;;  %v2309_v54 = vld [vmem:[%s2373_s20 + $0x110] sm:$0xff] }
 0x16c   : > { %729 = vrot.lane.b32.xlu0 %v2307_v57, %s2328_s23 }
 0x16d   : > { %v1184_v61 = vpop.permute.xlu1 %1183 }
 0x16e   : > { %v1505_v7 = vsel %vm1498_vm10, %v1472_v36, %v1184_v61  ;;  %v1090_v46 = vpop.permute.xlu0 %1089  ;;  %v4146_v36 = vld [vmem:[#allocation18_spill] sm:$0xff] }
 0x16f   : > { %1203 = vrot.lane.b32.xlu1 %v4141_v34, %s2333_s12  ;;  %2230 = vmatprep.mubr.msk.f32.mxu0 %vm1543_vm11, %v1505_v7  ;;  %v1473_v42 = vsel %vm1465_vm9, %v1440_v26, %v1090_v46 }
 0x170   : > { %1109 = vrot.lane.b32.xlu0 %v4142_v1, %s2332_s11 }
 0x171   : > { %v900_v9 = vpop.permute.xlu1 %899 }
 0x172   : > { %v806_v40 = vpop.permute.xlu0 %805  ;;  %v1408_v13 = vsel %vm1399_vm7, %v1375_v52, %v900_v9  ;;  %v4147_v9 = vld [vmem:[#allocation37_spill] sm:$0xff] }
 0x173   : > { %919 = vrot.lane.b32.xlu1 %v4141_v34, %s2330_s29  ;;  %v1376_v16 = vsel %vm1366_vm6, %v1343_v12, %v806_v40 }
 0x174   : > { %825 = vrot.lane.b32.xlu0 %v4142_v1, %s2329_s24 }
 0x175   : > { %v902_v50 = vpop.permute.xlu1 %901 }
 0x176   : > { %v1186_v53 = vpop.permute.xlu0 %1185  ;;  %v1409_v18 = vsel %vm1399_vm7, %v1376_v16, %v902_v50  ;;  %v2312_v16 = vld [vmem:[%s2373_s20 + $0x138] sm:$0xff] }
 0x177   : > { %v1506_v55 = vsel %vm1498_vm10, %v1473_v42, %v1186_v53  ;;  %921 = vrot.lane.b32.xlu1 %v4143_v41, %s2330_s29 }
 0x178   : > { %1205 = vrot.lane.b32.xlu0 %v4143_v41, %s2333_s12  ;;  %2231 = vmatmul.mubr.msk.f32.gmra.mrb[6].mxu0 %vm1543_vm11, %v1506_v55  ;;  %v4148_v55 = vld [vmem:[#allocation21_spill] sm:$0xff] }
 0x179   : > { %v998_v62 = vpop.permute.xlu1 %997 }
 0x17a   : > { %v996_v19 = vpop.permute.xlu0 %995  ;;  %v1442_v61 = vsel %vm1432_vm8, %v1409_v18, %v998_v62  ;;  %v2311_v62 = vld [vmem:[%s2373_s20 + $0x128] sm:$0xff] }
 0x17b   : > { %731 = vrot.lane.b32.xlu1 %v2308_v32, %s2328_s23  ;;  %v1441_v29 = vsel %vm1432_vm8, %v1408_v13, %v996_v19  ;;  %v4149_v13 = vld [vmem:[#allocation40_spill] sm:$0xff] }
 0x17c   : > { %1015 = vrot.lane.b32.xlu0 %v2308_v32, %s2331_s8 }
 0x17d   : > { %v808_v11 = vpop.permute.xlu1 %807 }
 0x17e   : > { %v1092_v59 = vpop.permute.xlu0 %1091  ;;  %v1377_v50 = vsel %vm1366_vm6, %v1344_v8, %v808_v11  ;;  %v1345_v11 = vsel %vm1333_vm5, %v3113_v33, %v3320_v47 }
 0x17f   : > { %1111 = vrot.lane.b32.xlu1 %v4144_v39, %s2332_s11  ;;  %v1474_v3 = vsel %vm1465_vm9, %v1441_v29, %v1092_v59  ;;  %v4150_v29 = vld [vmem:[#allocation20_spill] sm:$0xff] }
 0x180   : > { %1017 = vrot.lane.b32.xlu0 %v2309_v54, %s2331_s8 }
 0x181   : > { %v1188_v57 = vpop.permute.xlu1 %1187 }
 0x182   : > { %v1507_v27 = vsel %vm1498_vm10, %v1474_v3, %v1188_v57  ;;  %v1094_v14 = vpop.permute.xlu0 %1093 }
 0x183   : > { %827 = vrot.lane.b32.xlu1 %v4144_v39, %s2329_s24  ;;  %2233 = vmatprep.mubr.msk.f32.mxu0 %vm1543_vm11, %v1507_v27  ;;  %v1475_v46 = vsel %vm1465_vm9, %v1442_v61, %v1094_v14 }
 0x184   : > { %733 = vrot.lane.b32.xlu0 %v2309_v54, %s2328_s23 }
 0x185   : > { %v904_v58 = vpop.permute.xlu1 %903 }
 0x186   : > { %v810_v28 = vpop.permute.xlu0 %809  ;;  %v1410_v53 = vsel %vm1399_vm7, %v1377_v50, %v904_v58  ;;  %v4151_v58 = vld [vmem:[#allocation39_spill] sm:$0xff] }
 0x187   : > { %1207 = vrot.lane.b32.xlu1 %v4145_v6, %s2333_s12  ;;  %v1378_v59 = vsel %vm1366_vm6, %v1345_v11, %v810_v28  ;;  %v2314_v11 = vld [vmem:[%s2373_s20 + $0x150] sm:$0xff] }
 0x188   : > { %1113 = vrot.lane.b32.xlu0 %v4146_v36, %s2332_s11 }
 0x189   : > { %v906_v7 = vpop.permute.xlu1 %905 }
 0x18a   : > { %v1190_v34 = vpop.permute.xlu0 %1189  ;;  %v1411_v39 = vsel %vm1399_vm7, %v1378_v59, %v906_v7 }
 0x18b   : > { %v1508_v49 = vsel %vm1498_vm10, %v1475_v46, %v1190_v34  ;;  %923 = vrot.lane.b32.xlu1 %v4145_v6, %s2330_s29  ;;  %v4152_v46 = vld [vmem:[#allocation23_spill] sm:$0xff] }
 0x18c   : > { %829 = vrot.lane.b32.xlu0 %v4146_v36, %s2329_s24  ;;  %2234 = vmatmul.mubr.msk.f32.gmra.mrb[8].mxu0 %vm1543_vm11, %v1508_v49  ;;  %v2313_v49 = vld [vmem:[%s2373_s20 + $0x140] sm:$0xff] }
 0x18d   : > { %v716_v37 = vpop.permute.xlu1 %715 }
 0x18e   : > { %v1000_v1 = vpop.permute.xlu0 %999  ;;  %v1346_v6 = vsel %vm1333_vm5, %v3132_v23, %v716_v37 }
 0x18f   : > { %925 = vrot.lane.b32.xlu1 %v4147_v9, %s2330_s29  ;;  %v1443_v41 = vsel %vm1432_vm8, %v1410_v53, %v1000_v1  ;;  %v4154_v53 = vld [vmem:[#allocation22_spill] sm:$0xff] }
 0x190   : > { %1209 = vrot.lane.b32.xlu0 %v4147_v9, %s2333_s12 }
 0x191   : > { %v1096_v60 = vpop.permute.xlu1 %1095 }
 0x192   : > { %v1002_v40 = vpop.permute.xlu0 %1001  ;;  %v1476_v19 = vsel %vm1465_vm9, %v1443_v41, %v1096_v60 }
 0x193   : > { %735 = vrot.lane.b32.xlu1 %v2310_v56, %s2328_s23  ;;  %v1444_v54 = vsel %vm1432_vm8, %v1411_v39, %v1002_v40 }
 0x194   : > { %1019 = vrot.lane.b32.xlu0 %v2310_v56, %s2331_s8 }
 0x195   : > { %v812_v26 = vpop.permute.xlu1 %811 }
 0x196   : > { %v718_v42 = vpop.permute.xlu0 %717  ;;  %v1379_v36 = vsel %vm1366_vm6, %v1346_v6, %v812_v26  ;;  %v4153_v26 = vld [vmem:[#allocation43_spill] sm:$0xff] }
 0x197   : > { %1115 = vrot.lane.b32.xlu1 %v4148_v55, %s2332_s11  ;;  %v1347_v40 = vsel %vm1333_vm5, %v3129_v22, %v718_v42 }
 0x198   : > { %1021 = vrot.lane.b32.xlu0 %v2311_v62, %s2331_s8 }
 0x199   : > { %v1192_v32 = vpop.permute.xlu1 %1191 }
 0x19a   : > { %v1509_v48 = vsel %vm1498_vm10, %v1476_v19, %v1192_v32  ;;  %v1098_v24 = vpop.permute.xlu0 %1097 }
 0x19b   : > { %831 = vrot.lane.b32.xlu1 %v4148_v55, %s2329_s24  ;;  %2236 = vmatprep.mubr.msk.f32.mxu0 %vm1543_vm11, %v1509_v48  ;;  %v1477_v57 = vsel %vm1465_vm9, %v1444_v54, %v1098_v24  ;;  %v4155_v48 = vld [vmem:[#allocation41_spill] sm:$0xff] }
 0x19c   : > { %737 = vrot.lane.b32.xlu0 %v2311_v62, %s2328_s23  ;;  %v4156_v54 = vld [vmem:[#allocation25_spill] sm:$0xff] }
 0x19d   : > { %v908_v38 = vpop.permute.xlu1 %907 }
 0x19e   : > { %v814_v52 = vpop.permute.xlu0 %813  ;;  %v1412_v7 = vsel %vm1399_vm7, %v1379_v36, %v908_v38 }
 0x19f   : > { %1211 = vrot.lane.b32.xlu1 %v4149_v13, %s2333_s12  ;;  %v1380_v8 = vsel %vm1366_vm6, %v1347_v40, %v814_v52 }
 0x1a0   : > { %1117 = vrot.lane.b32.xlu0 %v4150_v29, %s2332_s11 }
 0x1a1   : > { %v910_v3 = vpop.permute.xlu1 %909 }
 0x1a2   : > { %v1194_v27 = vpop.permute.xlu0 %1193  ;;  %v1413_v50 = vsel %vm1399_vm7, %v1380_v8, %v910_v3 }
 0x1a3   : > { %v1510_v33 = vsel %vm1498_vm10, %v1477_v57, %v1194_v27  ;;  %927 = vrot.lane.b32.xlu1 %v4149_v13, %s2330_s29  ;;  %v2315_v57 = vld [vmem:[%s2373_s20 + $0x158] sm:$0xff] }
 0x1a4   : > { %833 = vrot.lane.b32.xlu0 %v4150_v29, %s2329_s24  ;;  %2237 = vmatmul.mubr.msk.f32.gmra.mrb[10].mxu0 %vm1543_vm11, %v1510_v33 }
 0x1a5   : > { %v720_v47 = vpop.permute.xlu1 %719 }
 0x1a6   : > { %v1004_v14 = vpop.permute.xlu0 %1003  ;;  %v1348_v52 = vsel %vm1333_vm5, %v3148_v43, %v720_v47 }
 0x1a7   : > { %929 = vrot.lane.b32.xlu1 %v4151_v58, %s2330_s29  ;;  %v1445_v34 = vsel %vm1432_vm8, %v1412_v7, %v1004_v14 }
 0x1a8   : > { %1213 = vrot.lane.b32.xlu0 %v4151_v58, %s2333_s12 }
 0x1a9   : > { %v1100_v12 = vpop.permute.xlu1 %1099 }
 0x1aa   : > { %v1006_v28 = vpop.permute.xlu0 %1005  ;;  %v1478_v1 = vsel %vm1465_vm9, %v1445_v34, %v1100_v12 }
 0x1ab   : > { %739 = vrot.lane.b32.xlu1 %v2312_v16, %s2328_s23  ;;  %v1446_v55 = vsel %vm1432_vm8, %v1413_v50, %v1006_v28  ;;  %v4160_v50 = vld [vmem:[#allocation27_spill] sm:$0xff] }
 0x1ac   : > { %1023 = vrot.lane.b32.xlu0 %v2312_v16, %s2331_s8  ;;  %v4157_v16 = vld [vmem:[#allocation47_spill] sm:$0xff] }
 0x1ad   : > { %v816_v18 = vpop.permute.xlu1 %815 }
 0x1ae   : > { %v722_v61 = vpop.permute.xlu0 %721  ;;  %v1381_v13 = vsel %vm1366_vm6, %v1348_v52, %v816_v18  ;;  %v4158_v18 = vld [vmem:[#allocation24_spill] sm:$0xff] }
 0x1af   : > { %1119 = vrot.lane.b32.xlu1 %v4152_v46, %s2332_s11  ;;  %v1349_v58 = vsel %vm1333_vm5, %v3145_v21, %v722_v61 }
 0x1b0   : > { %1025 = vrot.lane.b32.xlu0 %v2313_v49, %s2331_s8 }
 0x1b1   : > { %v1196_v9 = vpop.permute.xlu1 %1195 }
 0x1b2   : > { %v1511_v60 = vsel %vm1498_vm10, %v1478_v1, %v1196_v9  ;;  %v1102_v23 = vpop.permute.xlu0 %1101  ;;  %v4159_v1 = vld [vmem:[#allocation45_spill] sm:$0xff] }
 0x1b3   : > { %835 = vrot.lane.b32.xlu1 %v4152_v46, %s2329_s24  ;;  %2239 = vmatprep.mubr.msk.f32.mxu0 %vm1543_vm11, %v1511_v60  ;;  %v1479_v62 = vsel %vm1465_vm9, %v1446_v55, %v1102_v23  ;;  %v2316_v23 = vld [vmem:[%s2373_s20 + $0x168] sm:$0xff]  ;;  %v2317_v55 = vld [vmem:[%s2373_s20 + $0x170] sm:$0xff] }
 0x1b4   : > { %741 = vrot.lane.b32.xlu0 %v2313_v49, %s2328_s23 }
 0x1b5   : > { %v912_v37 = vpop.permute.xlu1 %911 }
 0x1b6   : > { %v818_v56 = vpop.permute.xlu0 %817  ;;  %v1414_v29 = vsel %vm1399_vm7, %v1381_v13, %v912_v37 }
 0x1b7   : > { %1215 = vrot.lane.b32.xlu1 %v4153_v26, %s2333_s12  ;;  %v1382_v28 = vsel %vm1366_vm6, %v1349_v58, %v818_v56 }
 0x1b8   : > { %1121 = vrot.lane.b32.xlu0 %v4154_v53, %s2332_s11 }
 0x1b9   : > { %v914_v41 = vpop.permute.xlu1 %913 }
 0x1ba   : > { %v1198_v19 = vpop.permute.xlu0 %1197  ;;  %v1415_v6 = vsel %vm1399_vm7, %v1382_v28, %v914_v41 }
 0x1bb   : > { %v1512_v22 = vsel %vm1498_vm10, %v1479_v62, %v1198_v19  ;;  %931 = vrot.lane.b32.xlu1 %v4153_v26, %s2330_s29 }
 0x1bc   : > { %837 = vrot.lane.b32.xlu0 %v4154_v53, %s2329_s24  ;;  %2240 = vmatmul.mubr.msk.f32.gmra.mrb[12].mxu0 %vm1543_vm11, %v1512_v22 }
 0x1bd   : > { %v724_v42 = vpop.permute.xlu1 %723 }
 0x1be   : > { %v1008_v32 = vpop.permute.xlu0 %1007  ;;  %v1350_v37 = vsel %vm1333_vm5, %v3164_v30, %v724_v42 }
 0x1bf   : > { %933 = vrot.lane.b32.xlu1 %v4155_v48, %s2330_s29  ;;  %v1447_v3 = vsel %vm1432_vm8, %v1414_v29, %v1008_v32 }
 0x1c0   : > { %1217 = vrot.lane.b32.xlu0 %v4155_v48, %s2333_s12 }
 0x1c1   : > { %v1104_v24 = vpop.permute.xlu1 %1103 }
 0x1c2   : > { %v1010_v38 = vpop.permute.xlu0 %1009  ;;  %v1480_v27 = vsel %vm1465_vm9, %v1447_v3, %v1104_v24  ;;  %v4161_v24 = vld [vmem:[#allocation51_spill] sm:$0xff] }
 0x1c3   : > { %743 = vrot.lane.b32.xlu1 %v2314_v11, %s2328_s23  ;;  %v1448_v36 = vsel %vm1432_vm8, %v1415_v6, %v1010_v38  ;;  %v258_v3 = vld [vmem:[%s2373_s20 + $0x188] sm:$0xff] }
 0x1c4   : > { %1027 = vrot.lane.b32.xlu0 %v2314_v11, %s2331_s8  ;;  %v4162_v11 = vld [vmem:[#allocation26_spill] sm:$0xff] }
 0x1c5   : > { %v820_v59 = vpop.permute.xlu1 %819 }
 0x1c6   : > { %v726_v39 = vpop.permute.xlu0 %725  ;;  %v1383_v56 = vsel %vm1366_vm6, %v1350_v37, %v820_v59 }
 0x1c7   : > { %1123 = vrot.lane.b32.xlu1 %v4156_v54, %s2332_s11  ;;  %v1351_v42 = vsel %vm1333_vm5, %v3161_v20, %v726_v39 }
 0x1c8   : > { %1029 = vrot.lane.b32.xlu0 %v2315_v57, %s2331_s8 }
 0x1c9   : > { %v1200_v33 = vpop.permute.xlu1 %1199 }
 0x1ca   : > { %v1513_v14 = vsel %vm1498_vm10, %v1480_v27, %v1200_v33  ;;  %v1106_v43 = vpop.permute.xlu0 %1105  ;;  %v4163_v27 = vld [vmem:[#allocation49_spill] sm:$0xff] }
 0x1cb   : > { %839 = vrot.lane.b32.xlu1 %v4156_v54, %s2329_s24  ;;  %2242 = vmatprep.mubr.msk.f32.mxu0 %vm1543_vm11, %v1513_v14  ;;  %v1481_v46 = vsel %vm1465_vm9, %v1448_v36, %v1106_v43  ;;  %v257_v54 = vld [vmem:[%s2373_s20 + $0x180] sm:$0xff]  ;;  %v477_v14 = vrot.slane %v258_v3, 1 }
 0x1cc   : > { %745 = vrot.lane.b32.xlu0 %v2315_v57, %s2328_s23  ;;  %v476_v33 = vrot.slane %v257_v54, 1 }
 0x1cd   : > { %v916_v47 = vpop.permute.xlu1 %915 }
 0x1ce   : > { %v822_v12 = vpop.permute.xlu0 %821  ;;  %v1416_v26 = vsel %vm1399_vm7, %v1383_v56, %v916_v47  ;;  %v478_v58 = vsel %vm311_vm0, %v476_v33, %v477_v14 }
 0x1cf   : > { %1219 = vrot.lane.b32.xlu1 %v4157_v16, %s2333_s12  ;;  %v1384_v48 = vsel %vm1366_vm6, %v1351_v42, %v822_v12 }
 0x1d0   : > { %1125 = vrot.lane.b32.xlu0 %v4158_v18, %s2332_s11 }
 0x1d1   : > { %v918_v7 = vpop.permute.xlu1 %917 }
 0x1d2   : > { %v1202_v34 = vpop.permute.xlu0 %1201  ;;  %v1417_v38 = vsel %vm1399_vm7, %v1384_v48, %v918_v7 }
 0x1d3   : > { %v1514_v21 = vsel %vm1498_vm10, %v1481_v46, %v1202_v34  ;;  %935 = vrot.lane.b32.xlu1 %v4157_v16, %s2330_s29  ;;  %v481_v46 = vrot.slane %v257_v54, 2  ;;  %v482_v34 = vrot.slane %v258_v3, 2 }
 0x1d4   : > { %841 = vrot.lane.b32.xlu0 %v4158_v18, %s2329_s24  ;;  %2243 = vmatmul.mubr.msk.f32.gmra.mrb[14].mxu0 %vm1543_vm11, %v1514_v21  ;;  %v259_v18 = vld [vmem:[%s2373_s20 + $0x190] sm:$0x3] }
 0x1d5   : > { %v728_v61 = vpop.permute.xlu1 %727 }
 0x1d6   : > { %v1012_v49 = vpop.permute.xlu0 %1011  ;;  %v1352_v12 = vsel %vm1333_vm5, %v3180_v45, %v728_v61  ;;  %v479_v45 = vrot.slane %v259_v18, 1 }
 0x1d7   : > { %937 = vrot.lane.b32.xlu1 %v4159_v1, %s2330_s29  ;;  %v1449_v53 = vsel %vm1432_vm8, %v1416_v26, %v1012_v49 }
 0x1d8   : > { %1221 = vrot.lane.b32.xlu0 %v4159_v1, %s2333_s12 }
 0x1d9   : > { %v1108_v9 = vpop.permute.xlu1 %1107 }
 0x1da   : > { %v1014_v60 = vpop.permute.xlu0 %1013  ;;  %v1482_v41 = vsel %vm1465_vm9, %v1449_v53, %v1108_v9  ;;  %v483_v9 = vsel %vm392_vm1, %v481_v46, %v482_v34 }
 0x1db   : > { %747 = vrot.lane.b32.xlu1 %v2316_v23, %s2328_s23  ;;  %v1450_v52 = vsel %vm1432_vm8, %v1417_v38, %v1014_v60 }
 0x1dc   : > { %1031 = vrot.lane.b32.xlu0 %v2316_v23, %s2331_s8  ;;  %v480_v23 = vsel %vm311_vm0, %v477_v14, %v479_v45 }
 0x1dd   : > { %v824_v40 = vpop.permute.xlu1 %823 }
 0x1de   : > { %v3675_v8 = vpop.permute.xlu0 %729  ;;  %v1385_v16 = vsel %vm1366_vm6, %v1352_v12, %v824_v40 }
 0x1df   : > { %1127 = vrot.lane.b32.xlu1 %v4160_v50, %s2332_s11  ;;  %v1353_v37 = vsel %vm1333_vm5, %v3177_v0, %v3675_v8 }
 0x1e0   : > { %1033 = vrot.lane.b32.xlu0 %v2317_v55, %s2331_s8 }
 0x1e1   : > { %v1204_v62 = vpop.permute.xlu1 %1203 }
 0x1e2   : > { %v1110_v19 = vpop.permute.xlu0 %1109  ;;  %v1515_v30 = vsel %vm1498_vm10, %v1482_v41, %v1204_v62 }
 0x1e3   : > { %843 = vrot.lane.b32.xlu1 %v4160_v50, %s2329_s24  ;;  %2245 = vmatprep.mubr.msk.f32.mxu1 %vm1543_vm11, %v1515_v30  ;;  %v1483_v13 = vsel %vm1465_vm9, %v1450_v52, %v1110_v19  ;;  %v484_v50 = vrot.slane %v259_v18, 2  ;;  %v261_v30 = vld [vmem:[%s2373_s20 + $0x1a0] sm:$0xff] }
 0x1e4   : > { %749 = vrot.lane.b32.xlu0 %v2317_v55, %s2328_s23  ;;  %v490_v48 = vrot.slane %v261_v30, 1 }
 0x1e5   : > { %v920_v22 = vpop.permute.xlu1 %919  ;;  %v485_v62 = vsel %vm392_vm1, %v482_v34, %v484_v50 }
 0x1e6   : > { %v826_v32 = vpop.permute.xlu0 %825  ;;  %v1418_v36 = vsel %vm1399_vm7, %v1385_v16, %v920_v22  ;;  %v262_v22 = vld [vmem:[%s2373_s20 + $0x1a8] sm:$0x3] }
 0x1e7   : > { %1223 = vrot.lane.b32.xlu1 %v4161_v24, %s2333_s12  ;;  %v1386_v56 = vsel %vm1366_vm6, %v1353_v37, %v826_v32  ;;  %v260_v32 = vld [vmem:[%s2373_s20 + $0x198] sm:$0xff]  ;;  %s3784_s20 = scalar_lea.vmem %s3957_s3, %s2173_s17 }
 0x1e8   : > { %1129 = vrot.lane.b32.xlu0 %v4162_v11, %s2332_s11 }
 0x1e9   : > { %v922_v59 = vpop.permute.xlu1 %921 }
 0x1ea   : > { %v1206_v29 = vpop.permute.xlu0 %1205  ;;  %v1419_v26 = vsel %vm1399_vm7, %v1386_v56, %v922_v59  ;;  %v495_v59 = vrot.slane %v261_v30, 2 }
 0x1eb   : > { %v1516_v20 = vsel %vm1498_vm10, %v1483_v13, %v1206_v29  ;;  %939 = vrot.lane.b32.xlu1 %v4161_v24, %s2330_s29  ;;  %v492_v24 = vrot.slane %v262_v22, 1  ;;  %v497_v29 = vrot.slane %v262_v22, 2 }
 0x1ec   : > { %845 = vrot.lane.b32.xlu0 %v4162_v11, %s2329_s24  ;;  %2246 = vmatmul.mubr.msk.f32.vlgmr.msra.gmra.mrb[0].mxu1 %vm1543_vm11, %v1516_v20  ;;  %v489_v11 = vrot.slane %v260_v32, 1 }
 0x1ed   : > { %v3705_v39 = vpop.permute.xlu1 %731  ;;  %v493_v13 = vsel %vm311_vm0, %v490_v48, %v492_v24  ;;  %v498_v12 = vsel %vm392_vm1, %v495_v59, %v497_v29 }
 0x1ee   : > { %v1016_v57 = vpop.permute.xlu0 %1015  ;;  %v1354_v20 = vsel %vm1333_vm5, %v3196_v51, %v3705_v39 }
 0x1ef   : > { %941 = vrot.lane.b32.xlu1 %v4163_v27, %s2330_s29  ;;  %v1451_v7 = vsel %vm1432_vm8, %v1418_v36, %v1016_v57  ;;  %v3767_v57 = vld [vmem:[%s3956_s2] ss:$0 sm:$0xff] }
 0x1f0   : > { %1225 = vrot.lane.b32.xlu0 %v4163_v27, %s2333_s12  ;;  %v491_v27 = vsel %vm311_vm0, %v489_v11, %v490_v48 }
 0x1f1   : > { %v1112_v43 = vpop.permute.xlu1 %1111 }
 0x1f2   : > { %v1018_v47 = vpop.permute.xlu0 %1017  ;;  %v1484_v21 = vsel %vm1465_vm9, %v1451_v7, %v1112_v43 }
 0x1f3   : > { %751 = vrot.lane.b32.xlu1 %v257_v54, %s2328_s23  ;;  %v1452_v53 = vsel %vm1432_vm8, %v1419_v26, %v1018_v47 }
 0x1f4   : > { %1035 = vrot.lane.b32.xlu0 %v257_v54, %s2331_s8  ;;  %v494_v54 = vrot.slane %v260_v32, 2 }
 0x1f5   : > { %v828_v28 = vpop.permute.xlu1 %827 }
 0x1f6   : > { %v3719_v6 = vpop.permute.xlu0 %733  ;;  %v1387_v33 = vsel %vm1366_vm6, %v1354_v20, %v828_v28  ;;  %v496_v36 = vsel %vm392_vm1, %v494_v54, %v495_v59 }
 0x1f7   : > { %1131 = vrot.lane.b32.xlu1 %v478_v58, %s2332_s11 }
 0x1f8   : > { %1037 = vrot.lane.b32.xlu0 %v258_v3, %s2331_s8 }
 0x1f9   : > { %v1208_v49 = vpop.permute.xlu1 %1207 }
 0x1fa   : > { %v1517_v61 = vsel %vm1498_vm10, %v1484_v21, %v1208_v49  ;;  %v1114_v1 = vpop.permute.xlu0 %1113 }
 0x1fb   : > { %847 = vrot.lane.b32.xlu1 %v478_v58, %s2329_s24  ;;  %2248 = vmatprep.mubr.msk.f32.mxu1 %vm1543_vm11, %v1517_v61  ;;  %v1485_v0 = vsel %vm1465_vm9, %v1452_v53, %v1114_v1 }
 0x1fc   : > { %753 = vrot.lane.b32.xlu0 %v258_v3, %s2328_s23 }
 0x1fd   : > { %v924_v60 = vpop.permute.xlu1 %923 }
 0x1fe   : > { %v3736_v40 = vpop.permute.xlu0 %829  ;;  %v1420_v43 = vsel %vm1399_vm7, %v1387_v33, %v924_v60 }
 0x1ff   : > { %1227 = vrot.lane.b32.xlu1 %v483_v9, %s2333_s12 }
 0x200   : > { %1133 = vrot.lane.b32.xlu0 %v480_v23, %s2332_s11 }
 0x201   : > { %v3743_v55 = vpop.permute.xlu1 %925 }
 0x202   : > { %v1210_v8 = vpop.permute.xlu0 %1209 }
 0x203   : > { %v1518_v41 = vsel %vm1498_vm10, %v1485_v0, %v1210_v8  ;;  %943 = vrot.lane.b32.xlu1 %v483_v9, %s2330_s29  ;;  %v1355_v9 = vsel %vm1333_vm5, %v3193_v5, %v3719_v6 }
 0x204   : > { %849 = vrot.lane.b32.xlu0 %v480_v23, %s2329_s24  ;;  %2249 = vmatmul.mubr.msk.f32.gmra.mrb[2].mxu1 %vm1543_vm11, %v1518_v41  ;;  %v1388_v23 = vsel %vm1366_vm6, %v1355_v9, %v3736_v40  ;;  %s208_s24 = scalar_lea.vmem %s3958_s4, %s2136_s21 }
 0x205   : > { %v3751_v19 = vpop.permute.xlu1 %735  ;;  %v1421_v56 = vsel %vm1399_vm7, %v1388_v23, %v3743_v55 }
 0x206   : > { %v1020_v42 = vpop.permute.xlu0 %1019  ;;  %v1356_v22 = vsel %vm1333_vm5, %v3212_v10, %v3751_v19 }
 0x207   : > { %945 = vrot.lane.b32.xlu1 %v485_v62, %s2330_s29  ;;  %v1453_v51 = vsel %vm1432_vm8, %v1420_v43, %v1020_v42 }
 0x208   : > { %1229 = vrot.lane.b32.xlu0 %v485_v62, %s2333_s12 }
 0x209   : > { %v1116_v38 = vpop.permute.xlu1 %1115 }
 0x20a   : > { %v1022_v52 = vpop.permute.xlu0 %1021  ;;  %v1486_v16 = vsel %vm1465_vm9, %v1453_v51, %v1116_v38 }
 0x20b   : > { %1041 = vrot.lane.b32.xlu1 %v261_v30, %s2331_s8  ;;  %v1454_v26 = vsel %vm1432_vm8, %v1421_v56, %v1022_v52 }
 0x20c   : > { %1039 = vrot.lane.b32.xlu0 %v260_v32, %s2331_s8 }
 0x20d   : > { %v832_v3 = vpop.permute.xlu1 %831 }
 0x20e   : > { %v3771_v14 = vpop.permute.xlu0 %737  ;;  %v1389_v48 = vsel %vm1366_vm6, %v1356_v22, %v832_v3 }
 0x20f   : > { %v2223_v47 = vpop.f32.mrb[0].mxu0  ;;  %1137 = vrot.lane.b32.xlu1 %v493_v13, %s2332_s11  ;;  %v1357_v51 = vsel %vm1333_vm5, %v3209_v35, %v3771_v14 }
 0x210   : > { %v1716_v39 = vadd.f32 %v2223_v47, %v3767_v57  ;;  %v1710_v58 = vpop.f32.mrb[1].mxu0  ;;  %1135 = vrot.lane.b32.xlu0 %v491_v27, %s2332_s11 }
 0x211   : > { %v1711_v28 = vadd.f32 %v3767_v57, %v1710_v58  ;;  %v1212_v18 = vpop.permute.xlu1 %1211 }
 0x212   : > { %v1870_v7 = vmax.f32 %v1716_v39, 0.0  ;;  %v1519_v46 = vsel %vm1498_vm10, %v1486_v16, %v1212_v18  ;;  %v1118_v34 = vpop.permute.xlu0 %1117 }
 0x213   : > { %v1869_v21 = vmax.f32 %v1711_v28, 0.0  ;;  %1233 = vrot.lane.b32.xlu1 %v498_v12, %s2333_s12  ;;  %2251 = vmatprep.mubr.msk.f32.mxu1 %vm1543_vm11, %v1519_v46  ;;  %v1487_v53 = vsel %vm1465_vm9, %v1454_v26, %v1118_v34 }
 0x214   : > { %1902 = vst [vmem:[%s3784_s20 + $0x8] sm:$0xff] %v1870_v7  ;;  %v1971_v49 = vmul.f32 %v1870_v7, %v1870_v7  ;;  %1231 = vrot.lane.b32.xlu0 %v496_v36, %s2333_s12 }
 0x215   : > { %1901 = vst [vmem:[%s3784_s20] sm:$0xff] %v1869_v21  ;;  %v1933_v45 = vadd.f32 %v1870_v7, %v1869_v21  ;;  %v1970_v61 = vmul.f32 %v1869_v21, %v1869_v21  ;;  %v928_v1 = vpop.permute.xlu1 %927 }
 0x216   : > { %v834_v60 = vpop.permute.xlu0 %833  ;;  %v1422_v11 = vsel %vm1399_vm7, %v1389_v48, %v928_v1 }
 0x217   : > { %v2002_v37 = vadd.f32 %v1971_v49, %v1970_v61  ;;  %v1390_v58 = vsel %vm1366_vm6, %v1357_v51, %v834_v60 }
 0x219   : > { %v930_v50 = vpop.permute.xlu1 %929 }
 0x21a   : > { %v1214_v0 = vpop.permute.xlu0 %1213  ;;  %v1423_v12 = vsel %vm1399_vm7, %v1390_v58, %v930_v50 }
 0x21b   : > { %v1520_v8 = vsel %vm1498_vm10, %v1487_v53, %v1214_v0 }
 0x21c   : > { %2252 = vmatmul.mubr.msk.f32.gmra.mrb[4].mxu1 %vm1543_vm11, %v1520_v8 }
 0x21d   : > { %v740_v41 = vpop.permute.xlu1 %739 }
 0x21e   : > { %v1024_v5 = vpop.permute.xlu0 %1023  ;;  %v1358_v60 = vsel %vm1333_vm5, %v3228_v25, %v740_v41 }
 0x21f   : > { %v1455_v59 = vsel %vm1432_vm8, %v1422_v11, %v1024_v5 }
 0x221   : > { %v1120_v6 = vpop.permute.xlu1 %1119 }
 0x222   : > { %v1026_v40 = vpop.permute.xlu0 %1025  ;;  %v1488_v13 = vsel %vm1465_vm9, %v1455_v59, %v1120_v6 }
 0x223   : > { %v2226_v62 = vpop.f32.mrb[2].mxu0  ;;  %v1456_v16 = vsel %vm1432_vm8, %v1423_v12, %v1026_v40 }
 0x224   : > { %v1726_v30 = vadd.f32 %v2226_v62, %v3767_v57  ;;  %v1720_v55 = vpop.f32.mrb[3].mxu0 }
 0x225   : > { %v1721_v42 = vadd.f32 %v3767_v57, %v1720_v55  ;;  %v836_v32 = vpop.permute.xlu1 %835 }
 0x226   : > { %v1872_v24 = vmax.f32 %v1726_v30, 0.0  ;;  %v742_v38 = vpop.permute.xlu0 %741  ;;  %v1391_v26 = vsel %vm1366_vm6, %v1358_v60, %v836_v32 }
 0x227   : > { %v1871_v52 = vmax.f32 %v1721_v42, 0.0  ;;  %v1359_v22 = vsel %vm1333_vm5, %v3225_v2, %v742_v38 }
 0x228   : > { %1904 = vst [vmem:[%s3784_s20 + $0x18] sm:$0xff] %v1872_v24  ;;  %v1973_v27 = vmul.f32 %v1872_v24, %v1872_v24 }
 0x229   : > { %1903 = vst [vmem:[%s3784_s20 + $0x10] sm:$0xff] %v1871_v52  ;;  %v1934_v29 = vadd.f32 %v1933_v45, %v1871_v52  ;;  %v1972_v20 = vmul.f32 %v1871_v52, %v1871_v52  ;;  %v1216_v54 = vpop.permute.xlu1 %1215 }
 0x22a   : > { %v1521_v10 = vsel %vm1498_vm10, %v1488_v13, %v1216_v54  ;;  %v1122_v19 = vpop.permute.xlu0 %1121 }
 0x22b   : > { %v2003_v33 = vadd.f32 %v2002_v37, %v1972_v20  ;;  %2254 = vmatprep.mubr.msk.f32.mxu1 %vm1543_vm11, %v1521_v10  ;;  %v1935_v3 = vadd.f32 %v1934_v29, %v1872_v24  ;;  %v1489_v18 = vsel %vm1465_vm9, %v1456_v16, %v1122_v19 }
 0x22d   : > { %v932_v43 = vpop.permute.xlu1 %931  ;;  %v2004_v47 = vadd.f32 %v2003_v33, %v1973_v27 }
 0x22e   : > { %v838_v39 = vpop.permute.xlu0 %837  ;;  %v1424_v53 = vsel %vm1399_vm7, %v1391_v26, %v932_v43 }
 0x22f   : > { %v1392_v32 = vsel %vm1366_vm6, %v1359_v22, %v838_v39 }
 0x231   : > { %v934_v28 = vpop.permute.xlu1 %933 }
 0x232   : > { %v1218_v36 = vpop.permute.xlu0 %1217  ;;  %v1425_v48 = vsel %vm1399_vm7, %v1392_v32, %v934_v28 }
 0x233   : > { %v1522_v7 = vsel %vm1498_vm10, %v1489_v18, %v1218_v36 }
 0x234   : > { %2255 = vmatmul.mubr.msk.f32.gmra.mrb[6].mxu1 %vm1543_vm11, %v1522_v7 }
 0x235   : > { %v744_v46 = vpop.permute.xlu1 %743 }
 0x236   : > { %v1028_v34 = vpop.permute.xlu0 %1027  ;;  %v1360_v12 = vsel %vm1333_vm5, %v3244_v44, %v744_v46 }
 0x237   : > { %v2229_v35 = vpop.f32.mrb[4].mxu0  ;;  %v1457_v6 = vsel %vm1432_vm8, %v1424_v53, %v1028_v34 }
 0x238   : > { %v1736_v14 = vadd.f32 %v2229_v35, %v3767_v57  ;;  %v1730_v21 = vpop.f32.mrb[5].mxu0 }
 0x239   : > { %v1731_v49 = vadd.f32 %v3767_v57, %v1730_v21  ;;  %v1124_v45 = vpop.permute.xlu1 %1123 }
 0x23a   : > { %v1874_v61 = vmax.f32 %v1736_v14, 0.0  ;;  %v1030_v1 = vpop.permute.xlu0 %1029  ;;  %v1490_v40 = vsel %vm1465_vm9, %v1457_v6, %v1124_v45 }
 0x23b   : > { %v1873_v9 = vmax.f32 %v1731_v49, 0.0  ;;  %v1458_v24 = vsel %vm1432_vm8, %v1425_v48, %v1030_v1 }
 0x23c   : > { %1906 = vst [vmem:[%s3784_s20 + $0x28] sm:$0xff] %v1874_v61  ;;  %v1975_v0 = vmul.f32 %v1874_v61, %v1874_v61 }
 0x23d   : > { %1905 = vst [vmem:[%s3784_s20 + $0x20] sm:$0xff] %v1873_v9  ;;  %v1936_v23 = vadd.f32 %v1935_v3, %v1873_v9  ;;  %v1974_v37 = vmul.f32 %v1873_v9, %v1873_v9  ;;  %v840_v56 = vpop.permute.xlu1 %839 }
 0x23e   : > { %v746_v50 = vpop.permute.xlu0 %745  ;;  %v1393_v18 = vsel %vm1366_vm6, %v1360_v12, %v840_v56 }
 0x23f   : > { %v2005_v8 = vadd.f32 %v2004_v47, %v1974_v37  ;;  %v1937_v5 = vadd.f32 %v1936_v23, %v1874_v61  ;;  %v1361_v44 = vsel %vm1333_vm5, %v3241_v63, %v746_v50 }
 0x241   : > { %v1220_v62 = vpop.permute.xlu1 %1219  ;;  %v2006_v30 = vadd.f32 %v2005_v8, %v1975_v0 }
 0x242   : > { %v1523_v25 = vsel %vm1498_vm10, %v1490_v40, %v1220_v62  ;;  %v1126_v41 = vpop.permute.xlu0 %1125 }
 0x243   : > { %2257 = vmatprep.mubr.msk.f32.mxu1 %vm1543_vm11, %v1523_v25  ;;  %v1491_v52 = vsel %vm1465_vm9, %v1458_v24, %v1126_v41 }
 0x245   : > { %v936_v55 = vpop.permute.xlu1 %935 }
 0x246   : > { %v842_v42 = vpop.permute.xlu0 %841  ;;  %v1426_v7 = vsel %vm1399_vm7, %v1393_v18, %v936_v55 }
 0x247   : > { %v1394_v61 = vsel %vm1366_vm6, %v1361_v44, %v842_v42 }
 0x249   : > { %v938_v11 = vpop.permute.xlu1 %937 }
 0x24a   : > { %v1222_v59 = vpop.permute.xlu0 %1221  ;;  %v1427_v9 = vsel %vm1399_vm7, %v1394_v61, %v938_v11 }
 0x24b   : > { %v1524_v13 = vsel %vm1498_vm10, %v1491_v52, %v1222_v59  ;;  %v2232_v29 = vpop.f32.mrb[6].mxu0 }
 0x24c   : > { %v1746_v20 = vadd.f32 %v2232_v29, %v3767_v57  ;;  %v1740_v54 = vpop.f32.mrb[7].mxu0  ;;  %2258 = vmatmul.mubr.msk.f32.gmra.mrb[8].mxu1 %vm1543_vm11, %v1524_v13 }
 0x24d   : > { %v1741_v2 = vadd.f32 %v3767_v57, %v1740_v54  ;;  %v748_v38 = vpop.permute.xlu1 %747 }
 0x24e   : > { %v1876_v10 = vmax.f32 %v1746_v20, 0.0  ;;  %v1032_v19 = vpop.permute.xlu0 %1031  ;;  %v1362_v32 = vsel %vm1333_vm5, %v3260_v31, %v748_v38 }
 0x24f   : > { %v1875_v27 = vmax.f32 %v1741_v2, 0.0  ;;  %v1459_v34 = vsel %vm1432_vm8, %v1426_v7, %v1032_v19 }
 0x250   : > { %1908 = vst [vmem:[%s3784_s20 + $0x38] sm:$0xff] %v1876_v10  ;;  %v1977_v51 = vmul.f32 %v1876_v10, %v1876_v10 }
 0x251   : > { %1907 = vst [vmem:[%s3784_s20 + $0x30] sm:$0xff] %v1875_v27  ;;  %v1938_v33 = vadd.f32 %v1937_v5, %v1875_v27  ;;  %v1976_v3 = vmul.f32 %v1875_v27, %v1875_v27  ;;  %v1128_v43 = vpop.permute.xlu1 %1127 }
 0x252   : > { %v1034_v47 = vpop.permute.xlu0 %1033  ;;  %v1492_v35 = vsel %vm1465_vm9, %v1459_v34, %v1128_v43 }
 0x253   : > { %v2007_v39 = vadd.f32 %v2006_v30, %v1976_v3  ;;  %v1939_v58 = vadd.f32 %v1938_v33, %v1876_v10  ;;  %v1460_v37 = vsel %vm1432_vm8, %v1427_v9, %v1034_v47 }
 0x255   : > { %v844_v16 = vpop.permute.xlu1 %843  ;;  %v2008_v28 = vadd.f32 %v2007_v39, %v1977_v51 }
 0x256   : > { %v750_v36 = vpop.permute.xlu0 %749  ;;  %v1395_v24 = vsel %vm1366_vm6, %v1362_v32, %v844_v16 }
 0x257   : > { %v1363_v31 = vsel %vm1333_vm5, %v3257_v15, %v750_v36 }
 0x259   : > { %v1224_v14 = vpop.permute.xlu1 %1223 }
 0x25a   : > { %v1525_v21 = vsel %vm1498_vm10, %v1492_v35, %v1224_v14  ;;  %v1130_v49 = vpop.permute.xlu0 %1129 }
 0x25b   : > { %2260 = vmatprep.mubr.msk.f32.mxu1 %vm1543_vm11, %v1525_v21  ;;  %v1493_v53 = vsel %vm1465_vm9, %v1460_v37, %v1130_v49 }
 0x25d   : > { %v940_v45 = vpop.permute.xlu1 %939 }
 0x25e   : > { %v846_v46 = vpop.permute.xlu0 %845  ;;  %v1428_v52 = vsel %vm1399_vm7, %v1395_v24, %v940_v45 }
 0x25f   : > { %v2235_v1 = vpop.f32.mrb[8].mxu0  ;;  %v1396_v10 = vsel %vm1366_vm6, %v1363_v31, %v846_v46 }
 0x260   : > { %v1756_v60 = vadd.f32 %v2235_v1, %v3767_v57  ;;  %v1750_v23 = vpop.f32.mrb[9].mxu0 }
 0x261   : > { %v1751_v56 = vadd.f32 %v3767_v57, %v1750_v23  ;;  %v942_v26 = vpop.permute.xlu1 %941 }
 0x262   : > { %v1878_v0 = vmax.f32 %v1756_v60, 0.0  ;;  %v1226_v8 = vpop.permute.xlu0 %1225  ;;  %v1429_v27 = vsel %vm1399_vm7, %v1396_v10, %v942_v26 }
 0x263   : > { %v1877_v63 = vmax.f32 %v1751_v56, 0.0  ;;  %v1526_v50 = vsel %vm1498_vm10, %v1493_v53, %v1226_v8 }
 0x264   : > { %1910 = vst [vmem:[%s3784_s20 + $0x48] sm:$0xff] %v1878_v0  ;;  %2261 = vmatmul.mubr.msk.f32.gmra.mrb[10].mxu1 %vm1543_vm11, %v1526_v50  ;;  %v1979_v30 = vmul.f32 %v1878_v0, %v1878_v0 }
 0x265   : > { %1909 = vst [vmem:[%s3784_s20 + $0x40] sm:$0xff] %v1877_v63  ;;  %v1940_v5 = vadd.f32 %v1939_v58, %v1877_v63  ;;  %v1978_v6 = vmul.f32 %v1877_v63, %v1877_v63  ;;  %v752_v40 = vpop.permute.xlu1 %751 }
 0x266   : > { %v1036_v62 = vpop.permute.xlu0 %1035  ;;  %v1364_v44 = vsel %vm1333_vm5, %v3276_v4, %v752_v40 }
 0x267   : > { %v2009_v25 = vadd.f32 %v2008_v28, %v1978_v6  ;;  %v1941_v41 = vadd.f32 %v1940_v5, %v1878_v0  ;;  %v1461_v59 = vsel %vm1432_vm8, %v1428_v52, %v1036_v62 }
 0x269   : > { %v1132_v55 = vpop.permute.xlu1 %1131  ;;  %v2010_v22 = vadd.f32 %v2009_v25, %v1979_v30 }
 0x26a   : > { %v1038_v42 = vpop.permute.xlu0 %1037  ;;  %v1494_v13 = vsel %vm1465_vm9, %v1461_v59, %v1132_v55 }
 0x26b   : > { %v1462_v43 = vsel %vm1432_vm8, %v1429_v27, %v1038_v42 }
 0x26d   : > { %v848_v48 = vpop.permute.xlu1 %847 }
 0x26e   : > { %v754_v11 = vpop.permute.xlu0 %753  ;;  %v1397_v1 = vsel %vm1366_vm6, %v1364_v44, %v848_v48 }
 0x26f   : > { %v1365_v21 = vsel %vm1333_vm5, %v3273_v17, %v754_v11 }
 0x271   : > { %v1228_v29 = vpop.permute.xlu1 %1227 }
 0x272   : > { %v1527_v20 = vsel %vm1498_vm10, %v1494_v13, %v1228_v29  ;;  %v1134_v54 = vpop.permute.xlu0 %1133 }
 0x273   : > { %2263 = vmatprep.mubr.msk.f32.mxu1 %vm1543_vm11, %v1527_v20  ;;  %v1495_v39 = vsel %vm1465_vm9, %v1462_v43, %v1134_v54 }
 0x275   : > { %v944_v2 = vpop.permute.xlu1 %943 }
 0x276   : > { %v850_v38 = vpop.permute.xlu0 %849  ;;  %v1430_v60 = vsel %vm1399_vm7, %v1397_v1, %v944_v2 }
 0x277   : > { %v2238_v19 = vpop.f32.mrb[10].mxu0  ;;  %v1398_v46 = vsel %vm1366_vm6, %v1365_v21, %v850_v38 }
 0x278   : > { %v1766_v33 = vadd.f32 %v2238_v19, %v3767_v57  ;;  %v1760_v3 = vpop.f32.mrb[11].mxu0 }
 0x279   : > { %v1761_v47 = vadd.f32 %v3767_v57, %v1760_v3  ;;  %v946_v51 = vpop.permute.xlu1 %945 }
 0x27a   : > { %v1880_v58 = vmax.f32 %v1766_v33, 0.0  ;;  %v1230_v12 = vpop.permute.xlu0 %1229  ;;  %v1431_v9 = vsel %vm1399_vm7, %v1398_v46, %v946_v51 }
 0x27b   : > { %v1879_v15 = vmax.f32 %v1761_v47, 0.0  ;;  %v1528_v16 = vsel %vm1498_vm10, %v1495_v39, %v1230_v12 }
 0x27c   : > { %1912 = vst [vmem:[%s3784_s20 + $0x58] sm:$0xff] %v1880_v58  ;;  %2264 = vmatmul.mubr.msk.f32.gmra.mrb[12].mxu1 %vm1543_vm11, %v1528_v16  ;;  %v1981_v34 = vmul.f32 %v1880_v58, %v1880_v58 }
 0x27d   : > { %1911 = vst [vmem:[%s3784_s20 + $0x50] sm:$0xff] %v1879_v15  ;;  %v1942_v28 = vadd.f32 %v1941_v41, %v1879_v15  ;;  %v1980_v18 = vmul.f32 %v1879_v15, %v1879_v15  ;;  %v1042_v36 = vpop.permute.xlu1 %1041 }
 0x27e   : > { %v1040_v7 = vpop.permute.xlu0 %1039  ;;  %v1464_v23 = vsel %vm1432_vm8, %v1431_v9, %v1042_v36 }
 0x27f   : > { %v2011_v35 = vadd.f32 %v2010_v22, %v1980_v18  ;;  %v1943_v14 = vadd.f32 %v1942_v28, %v1880_v58  ;;  %v1463_v37 = vsel %vm1432_vm8, %v1430_v60, %v1040_v7 }
 0x281   : > { %v1138_v49 = vpop.permute.xlu1 %1137  ;;  %v2012_v45 = vadd.f32 %v2011_v35, %v1981_v34 }
 0x282   : > { %v1136_v61 = vpop.permute.xlu0 %1135  ;;  %v1497_v17 = vsel %vm1465_vm9, %v1464_v23, %v1138_v49 }
 0x283   : > { %v1496_v4 = vsel %vm1465_vm9, %v1463_v37, %v1136_v61 }
 0x285   : > { %v1234_v56 = vpop.permute.xlu1 %1233 }
 0x286   : > { %v1530_v26 = vsel %vm1498_vm10, %v1497_v17, %v1234_v56  ;;  %v1232_v53 = vpop.permute.xlu0 %1231 }
 0x287   : > { %v1529_v0 = vsel %vm1498_vm10, %v1496_v4, %v1232_v53 }
 0x288   : > { %2266 = vmatprep.mubr.msk.f32.mxu1 %vm1543_vm11, %v1529_v0 }
 0x289   : > { %2267 = vmatmul.mubr.msk.f32.gmra.mrb[14].mxu1 %vm1543_vm11, %v1530_v26 }
 0x28f   : > { %v2241_v8 = vpop.f32.mrb[12].mxu0 }
 0x290   : > { %v1776_v63 = vadd.f32 %v2241_v8, %v3767_v57  ;;  %v1770_v50 = vpop.f32.mrb[13].mxu0 }
 0x291   : > { %v1771_v5 = vadd.f32 %v3767_v57, %v1770_v50 }
 0x292   : > { %v1882_v6 = vmax.f32 %v1776_v63, 0.0 }
 0x293   : > { %v1881_v40 = vmax.f32 %v1771_v5, 0.0 }
 0x294   : > { %1914 = vst [vmem:[%s3784_s20 + $0x68] sm:$0xff] %v1882_v6  ;;  %v1983_v25 = vmul.f32 %v1882_v6, %v1882_v6 }
 0x295   : > { %1913 = vst [vmem:[%s3784_s20 + $0x60] sm:$0xff] %v1881_v40  ;;  %v1944_v62 = vadd.f32 %v1943_v14, %v1881_v40  ;;  %v1982_v30 = vmul.f32 %v1881_v40, %v1881_v40 }
 0x297   : > { %v2013_v41 = vadd.f32 %v2012_v45, %v1982_v30  ;;  %v1945_v55 = vadd.f32 %v1944_v62, %v1882_v6 }
 0x299   : > { %v2014_v22 = vadd.f32 %v2013_v41, %v1983_v25 }
 0x2a7   : > { %v2244_v42 = vpop.f32.mrb[14].mxu0 }
 0x2a8   : > { %v1786_v32 = vadd.f32 %v2244_v42, %v3767_v57  ;;  %v1780_v48 = vpop.f32.mrb[15].mxu0 }
 0x2a9   : > { %v1781_v24 = vadd.f32 %v3767_v57, %v1780_v48 }
 0x2aa   : > { %v1884_v11 = vmax.f32 %v1786_v32, 0.0 }
 0x2ab   : > { %v1883_v52 = vmax.f32 %v1781_v24, 0.0 }
 0x2ac   : > { %1916 = vst [vmem:[%s3784_s20 + $0x78] sm:$0xff] %v1884_v11  ;;  %v1985_v29 = vmul.f32 %v1884_v11, %v1884_v11 }
 0x2ad   : > { %1915 = vst [vmem:[%s3784_s20 + $0x70] sm:$0xff] %v1883_v52  ;;  %v1946_v59 = vadd.f32 %v1945_v55, %v1883_v52  ;;  %v1984_v13 = vmul.f32 %v1883_v52, %v1883_v52 }
 0x2af   : > { %v2015_v20 = vadd.f32 %v2014_v22, %v1984_v13  ;;  %v1947_v54 = vadd.f32 %v1946_v59, %v1884_v11 }
 0x2b1   : > { %v2016_v2 = vadd.f32 %v2015_v20, %v1985_v29 }
 0x2bf   : > { %v2247_v31 = vpop.f32.mrb[0].mxu1 }
 0x2c0   : > { %v1796_v38 = vadd.f32 %v2247_v31, %v3767_v57  ;;  %v1790_v10 = vpop.f32.mrb[1].mxu1 }
 0x2c1   : > { %v1791_v19 = vadd.f32 %v3767_v57, %v1790_v10 }
 0x2c2   : > { %v1886_v27 = vmax.f32 %v1796_v38, 0.0 }
 0x2c3   : > { %v1885_v33 = vmax.f32 %v1791_v19, 0.0 }
 0x2c4   : > { %1918 = vst [vmem:[%s3784_s20 + $0x88] sm:$0xff] %v1886_v27  ;;  %v1987_v47 = vmul.f32 %v1886_v27, %v1886_v27 }
 0x2c5   : > { %1917 = vst [vmem:[%s3784_s20 + $0x80] sm:$0xff] %v1885_v33  ;;  %v1948_v3 = vadd.f32 %v1947_v54, %v1885_v33  ;;  %v1986_v43 = vmul.f32 %v1885_v33, %v1885_v33 }
 0x2c7   : > { %v2017_v51 = vadd.f32 %v2016_v2, %v1986_v43  ;;  %v1949_v39 = vadd.f32 %v1948_v3, %v1886_v27 }
 0x2c9   : > { %v2018_v58 = vadd.f32 %v2017_v51, %v1987_v47 }
 0x2d7   : > { %v2250_v12 = vpop.f32.mrb[2].mxu1 }
 0x2d8   : > { %v1806_v15 = vadd.f32 %v2250_v12, %v3767_v57  ;;  %v1800_v16 = vpop.f32.mrb[3].mxu1 }
 0x2d9   : > { %v1801_v28 = vadd.f32 %v3767_v57, %v1800_v16 }
 0x2da   : > { %v1888_v18 = vmax.f32 %v1806_v15, 0.0 }
 0x2db   : > { %v1887_v36 = vmax.f32 %v1801_v28, 0.0 }
 0x2dc   : > { %1920 = vst [vmem:[%s3784_s20 + $0x98] sm:$0xff] %v1888_v18  ;;  %v1989_v35 = vmul.f32 %v1888_v18, %v1888_v18 }
 0x2dd   : > { %1919 = vst [vmem:[%s3784_s20 + $0x90] sm:$0xff] %v1887_v36  ;;  %v1950_v7 = vadd.f32 %v1949_v39, %v1887_v36  ;;  %v1988_v34 = vmul.f32 %v1887_v36, %v1887_v36 }
 0x2df   : > { %v2019_v14 = vadd.f32 %v2018_v58, %v1988_v34  ;;  %v1951_v21 = vadd.f32 %v1950_v7, %v1888_v18 }
 0x2e1   : > { %v2020_v49 = vadd.f32 %v2019_v14, %v1989_v35 }
 0x2ef   : > { %v2253_v45 = vpop.f32.mrb[4].mxu1 }
 0x2f0   : > { %v1816_v44 = vadd.f32 %v2253_v45, %v3767_v57  ;;  %v1810_v46 = vpop.f32.mrb[5].mxu1 }
 0x2f1   : > { %v1811_v61 = vadd.f32 %v3767_v57, %v1810_v46 }
 0x2f2   : > { %v1890_v1 = vmax.f32 %v1816_v44, 0.0 }
 0x2f3   : > { %v1889_v9 = vmax.f32 %v1811_v61, 0.0 }
 0x2f4   : > { %1922 = vst [vmem:[%s3784_s20 + $0xa8] sm:$0xff] %v1890_v1  ;;  %v1991_v37 = vmul.f32 %v1890_v1, %v1890_v1 }
 0x2f5   : > { %1921 = vst [vmem:[%s3784_s20 + $0xa0] sm:$0xff] %v1889_v9  ;;  %v1952_v60 = vadd.f32 %v1951_v21, %v1889_v9  ;;  %v1990_v23 = vmul.f32 %v1889_v9, %v1889_v9 }
 0x2f7   : > { %v2021_v17 = vadd.f32 %v2020_v49, %v1990_v23  ;;  %v1953_v56 = vadd.f32 %v1952_v60, %v1890_v1 }
 0x2f9   : > { %v2022_v4 = vadd.f32 %v2021_v17, %v1991_v37 }
 0x307   : > { %v2256_v26 = vpop.f32.mrb[6].mxu1 }
 0x308   : > { %v1826_v53 = vadd.f32 %v2256_v26, %v3767_v57  ;;  %v1820_v0 = vpop.f32.mrb[7].mxu1 }
 0x309   : > { %v1821_v8 = vadd.f32 %v3767_v57, %v1820_v0 }
 0x30a   : > { %v1892_v63 = vmax.f32 %v1826_v53, 0.0 }
 0x30b   : > { %v1891_v50 = vmax.f32 %v1821_v8, 0.0 }
 0x30c   : > { %1924 = vst [vmem:[%s3784_s20 + $0xb8] sm:$0xff] %v1892_v63  ;;  %v1993_v40 = vmul.f32 %v1892_v63, %v1892_v63 }
 0x30d   : > { %1923 = vst [vmem:[%s3784_s20 + $0xb0] sm:$0xff] %v1891_v50  ;;  %v1954_v5 = vadd.f32 %v1953_v56, %v1891_v50  ;;  %v1992_v6 = vmul.f32 %v1891_v50, %v1891_v50 }
 0x30f   : > { %v2023_v62 = vadd.f32 %v2022_v4, %v1992_v6  ;;  %v1955_v30 = vadd.f32 %v1954_v5, %v1892_v63 }
 0x311   : > { %v2024_v25 = vadd.f32 %v2023_v62, %v1993_v40 }
 0x31f   : > { %v2259_v41 = vpop.f32.mrb[8].mxu1 }
 0x320   : > { %v1836_v55 = vadd.f32 %v2259_v41, %v3767_v57  ;;  %v1830_v22 = vpop.f32.mrb[9].mxu1 }
 0x321   : > { %v1831_v42 = vadd.f32 %v3767_v57, %v1830_v22 }
 0x322   : > { %v1894_v32 = vmax.f32 %v1836_v55, 0.0 }
 0x323   : > { %v1893_v48 = vmax.f32 %v1831_v42, 0.0 }
 0x324   : > { %1926 = vst [vmem:[%s3784_s20 + $0xc8] sm:$0xff] %v1894_v32  ;;  %v1995_v52 = vmul.f32 %v1894_v32, %v1894_v32 }
 0x325   : > { %1925 = vst [vmem:[%s3784_s20 + $0xc0] sm:$0xff] %v1893_v48  ;;  %v1956_v24 = vadd.f32 %v1955_v30, %v1893_v48  ;;  %v1994_v11 = vmul.f32 %v1893_v48, %v1893_v48 }
 0x327   : > { %v2025_v59 = vadd.f32 %v2024_v25, %v1994_v11  ;;  %v1957_v13 = vadd.f32 %v1956_v24, %v1894_v32 }
 0x329   : > { %v2026_v29 = vadd.f32 %v2025_v59, %v1995_v52 }
 0x337   : > { %v2262_v20 = vpop.f32.mrb[10].mxu1 }
 0x338   : > { %v1846_v54 = vadd.f32 %v2262_v20, %v3767_v57  ;;  %v1840_v2 = vpop.f32.mrb[11].mxu1 }
 0x339   : > { %v1841_v31 = vadd.f32 %v3767_v57, %v1840_v2 }
 0x33a   : > { %v1896_v38 = vmax.f32 %v1846_v54, 0.0 }
 0x33b   : > { %v1895_v10 = vmax.f32 %v1841_v31, 0.0 }
 0x33c   : > { %1928 = vst [vmem:[%s3784_s20 + $0xd8] sm:$0xff] %v1896_v38  ;;  %v1997_v33 = vmul.f32 %v1896_v38, %v1896_v38 }
 0x33d   : > { %1927 = vst [vmem:[%s3784_s20 + $0xd0] sm:$0xff] %v1895_v10  ;;  %v1958_v19 = vadd.f32 %v1957_v13, %v1895_v10  ;;  %v1996_v27 = vmul.f32 %v1895_v10, %v1895_v10 }
 0x33f   : > { %v2027_v3 = vadd.f32 %v2026_v29, %v1996_v27  ;;  %v1959_v43 = vadd.f32 %v1958_v19, %v1896_v38 }
 0x341   : > { %v2028_v47 = vadd.f32 %v2027_v3, %v1997_v33 }
 0x34f   : > { %v2265_v51 = vpop.f32.mrb[12].mxu1 }
 0x350   : > { %v1856_v39 = vadd.f32 %v2265_v51, %v3767_v57  ;;  %v1850_v58 = vpop.f32.mrb[13].mxu1 }
 0x351   : > { %v1851_v12 = vadd.f32 %v3767_v57, %v1850_v58 }
 0x352   : > { %v1898_v15 = vmax.f32 %v1856_v39, 0.0 }
 0x353   : > { %v1897_v16 = vmax.f32 %v1851_v12, 0.0 }
 0x354   : > { %1930 = vst [vmem:[%s3784_s20 + $0xe8] sm:$0xff] %v1898_v15  ;;  %v1999_v36 = vmul.f32 %v1898_v15, %v1898_v15 }
 0x355   : > { %1929 = vst [vmem:[%s3784_s20 + $0xe0] sm:$0xff] %v1897_v16  ;;  %v1960_v28 = vadd.f32 %v1959_v43, %v1897_v16  ;;  %v1998_v18 = vmul.f32 %v1897_v16, %v1897_v16 }
 0x357   : > { %v2029_v7 = vadd.f32 %v2028_v47, %v1998_v18  ;;  %v1961_v34 = vadd.f32 %v1960_v28, %v1898_v15 }
 0x359   : > { %v2030_v35 = vadd.f32 %v2029_v7, %v1999_v36 }
 0x35c   : > { %v2268_v14 = vpop.f32.mrb[14].mxu1 }
 0x35d   : > { %v1866_v21 = vadd.f32 %v2268_v14, %v3767_v57  ;;  %v1860_v49 = vpop.f32.mrb[15].mxu1 }
 0x35e   : > { %v1861_v45 = vadd.f32 %v3767_v57, %v1860_v49 }
 0x35f   : > { %v1900_v44 = vmax.f32 %v1866_v21, 0.0 }
 0x360   : > { %v1899_v46 = vmax.f32 %v1861_v45, 0.0 }
 0x361   : > { %1932 = vst [vmem:[%s3784_s20 + $0xf8] sm:$0xff] %v1900_v44  ;;  %v2001_v9 = vmul.f32 %v1900_v44, %v1900_v44 }
 0x362   : > { %1931 = vst [vmem:[%s3784_s20 + $0xf0] sm:$0xff] %v1899_v46  ;;  %v1962_v61 = vadd.f32 %v1961_v34, %v1899_v46  ;;  %v2000_v1 = vmul.f32 %v1899_v46, %v1899_v46 }
 0x364   : > { %v1963_v60 = vadd.f32 %v1962_v61, %v1900_v44  ;;  %v2031_v23 = vadd.f32 %v2030_v35, %v2000_v1 }
 0x366   : > { %v1964_v37 = vrot.slane %v1963_v60, 4  ;;  %v2032_v17 = vadd.f32 %v2031_v23, %v2001_v9 }
 0x368   : > { %v1965_v56 = vadd.f32 %v1964_v37, %v1963_v60  ;;  %v2033_v4 = vrot.slane %v2032_v17, 4 }
 0x36a   : > { %v1966_v26 = vrot.slane %v1965_v56, 2  ;;  %v2034_v53 = vadd.f32 %v2033_v4, %v2032_v17 }
 0x36c   : > { %v1967_v0 = vadd.f32 %v1966_v26, %v1965_v56  ;;  %v2035_v8 = vrot.slane %v2034_v53, 2 }
 0x36e   : > { %v1968_v63 = vrot.slane %v1967_v0, 1  ;;  %v2036_v57 = vadd.f32 %v2035_v8, %v2034_v53 }
 0x370   : > { %v2037_v50 = vrot.slane %v2036_v57, 1  ;;  %v1969_v5 = vadd.f32 %v1968_v63, %v1967_v0 }
 0x372   : > { %v2038_v6 = vadd.f32 %v2037_v50, %v2036_v57 }
 0x374   : > { %v2040_v40 = vsel %vm2039_vm12, %v1969_v5, %v2038_v6 }
 0x375   : > { %2041 = vst [vmem:[%s208_s24] sm:$0x3] %v2040_v40 }
 0x376 PF: > { %s15_s15 = sadd.s32 1, %s2324_s15  }
 0x377   : > { %p12_p4 = scmp.ge.s32.totalorder %s15_s15, 4  }
 0x379   :  { %14 = sbr.rel (!%p12_p4) target bundleno = 1 (0x1), region = 74 }

</bundles_post_ra>
